<compile_context>
chip_gen: v7x
topology: tpu7x:2x2x1
jax: 0.10.0
libtpu: 0.0.40
codegen_flags: <defaults>
</compile_context>

<pallas_src>
import functools

import jax
import jax.numpy as jnp
from jax import lax
from jax.experimental import pallas as pl
from jax.experimental.pallas import tpu as pltpu


def _layernorm(x, gamma, beta, eps=1e-5):
    # One-pass mean / E[x^2] (biased variance, like torch.nn.LayerNorm).
    mean = jnp.mean(x, axis=-1, keepdims=True)
    mean_sq = jnp.mean(x * x, axis=-1, keepdims=True)
    var = jnp.maximum(mean_sq - mean * mean, 0.0)
    return (x - mean) * lax.rsqrt(var + eps) * gamma + beta


def encoder_layer_kernel(
    # inputs
    xq_ref, xkv_ref,
    wq_ref, wkv_ref, wo_ref, w1_ref, w2_ref,
    vecd_ref, b1_ref,
    # outputs
    out_ref,
    # scratch
    kv_ref, q_ref, ctx_ref,
    *, num_heads, ffn_chunk,
):
    cdt = wq_ref.dtype                       # matmul compute dtype (bf16)
    TS = xq_ref.shape[1]                     # query tile rows
    S = xkv_ref.shape[1]                     # full sequence length
    D = xq_ref.shape[2]
    H = num_heads
    dh = D // H
    F = w1_ref.shape[1]

    # Packed (1, D) vectors, all f32.  Row 0 (bq) is pre-scaled by dh**-0.5.
    bq = vecd_ref[0:1, :]
    bk = vecd_ref[1:2, :]
    bv = vecd_ref[2:3, :]
    bo = vecd_ref[3:4, :]
    g1 = vecd_ref[4:5, :]
    be1 = vecd_ref[5:6, :]
    b2 = vecd_ref[6:7, :]
    g2 = vecd_ref[7:8, :]
    be2 = vecd_ref[8:9, :]

    # ---- K / V projection: once per batch (query-tile axis is innermost & sequential).
    @pl.when(pl.program_id(1) == 0)
    def _():
        xkv = xkv_ref[0].astype(cdt)                                        # (S, D)
        kv = jnp.dot(xkv, wkv_ref[...], preferred_element_type=jnp.float32)  # (S, 2D)
        k = kv[:, :D] + bk
        v = kv[:, D:2 * D] + bv
        kc = k.astype(cdt)
        vc = v.astype(cdt)
        for h in range(H):                    # head-major cache: (2H, S, dh)
            kv_ref[h] = kc[:, h * dh:(h + 1) * dh]
            kv_ref[H + h] = vc[:, h * dh:(h + 1) * dh]

    # ---- Multi-head self-attention, all heads batched into one dot_general. ----
    xq = xq_ref[0]                                                          # (TS, D) f32
    q = jnp.dot(xq.astype(cdt), wq_ref[...],
                preferred_element_type=jnp.float32) + bq                    # scale folded in
    qc = q.astype(cdt)
    for h in range(H):
        q_ref[h] = qc[:, h * dh:(h + 1) * dh]                               # (H, TS, dh)

    qh = q_ref[...]                                                         # (H, TS, dh)
    kh = kv_ref[0:H]                                                        # (H, S, dh)
    vh = kv_ref[H:2 * H]                                                    # (H, S, dh)

    s = jnp.einsum('hqd,hkd->hqk', qh, kh,
                   preferred_element_type=jnp.float32)                      # (H, TS, S)
    s = s - jnp.max(s, axis=-1, keepdims=True)
    p = jnp.exp(s)
    p = p * pl.reciprocal(jnp.sum(p, axis=-1, keepdims=True), approx=True)  # EUP recip
    ctx = jnp.einsum('hqk,hkd->hqd', p.astype(cdt), vh,
                     preferred_element_type=jnp.float32)                    # (H, TS, dh)

    # Merge heads into a lane-dense (TS, D) buffer, then one full MXU matmul for W_o.
    for h in range(H):
        ctx_ref[:, h * dh:(h + 1) * dh] = ctx[h].astype(cdt)
    attn = jnp.dot(ctx_ref[...], wo_ref[...],
                   preferred_element_type=jnp.float32) + bo
    y1 = _layernorm(xq + attn, g1, be1)                                     # (TS, D) f32

    # ---- Position-wise FFN, streamed over the hidden dim F. ----
    y1c = y1.astype(cdt)
    ff = jnp.zeros((TS, D), jnp.float32)
    for c in range(F // ffn_chunk):
        lo = c * ffn_chunk
        h1 = jnp.dot(y1c, w1_ref[:, lo:lo + ffn_chunk],
                     preferred_element_type=jnp.float32) + b1_ref[0:1, lo:lo + ffn_chunk]
        h1 = jnp.maximum(h1, 0.0)                                           # ReLU
        ff = ff + jnp.dot(h1.astype(cdt), w2_ref[lo:lo + ffn_chunk, :],
                          preferred_element_type=jnp.float32)
    y2 = _layernorm(y1 + ff + b2, g2, be2)

    out_ref[0] = y2.astype(out_ref.dtype)


def _pick_block_s(S):
    # Largest convenient sequence tile that divides S (full S for small inputs).
    if S <= 512:
        return S
    for ts in (512, 256, 128, 64, 32, 16, 8):
        if S % ts == 0:
            return ts
    return S


def _pick_ffn_chunk(F):
    if F <= 1024:
        return F
    for fc in (1024, 512, 256, 128):
        if F % fc == 0:
            return fc
    return F


def encoder_layer(x, params, num_heads, compute_dtype=jnp.bfloat16):
    B, S, D = x.shape
    F = params["w1"].shape[-1]
    assert D % num_heads == 0, "d_model must be divisible by num_heads"
    dh = D // num_heads
    scale = dh ** (-0.5)
    cdt = compute_dtype

    # Weights: bf16 for the MXU (f32 accumulation in-kernel); scale folded into wq/bq.
    wq = (params["wq"] * scale).astype(cdt)
    wkv = jnp.concatenate([params["wk"], params["wv"]], axis=-1).astype(cdt)   # (D, 2D)
    wo = params["wo"].astype(cdt)
    w1 = params["w1"].astype(cdt)
    w2 = params["w2"].astype(cdt)

    # Pack the nine D-length vectors into one (9, D) f32 input (fewer DMAs).
    vecd = jnp.concatenate(
        [params["bq"] * scale, params["bk"], params["bv"], params["bo"],
         params["ln1_g"], params["ln1_b"], params["b2"],
         params["ln2_g"], params["ln2_b"]],
        axis=0).astype(jnp.float32)                                            # (9, D)
    b1 = params["b1"].astype(jnp.float32)                                      # (1, F)

    ts = _pick_block_s(S)
    nq = S // ts
    ffn_chunk = _pick_ffn_chunk(F)

    const = lambda shape: pl.BlockSpec(shape, lambda b, qi: (0, 0))
    # TODO(synk): for very large D/F, also single-buffer the constant-index weight
    # specs (pipeline_mode=pl.Buffered(1)) and/or tile w1/w2 over F via the grid.
    in_specs = [
        pl.BlockSpec((1, ts, D), lambda b, qi: (b, qi, 0)),   # x (query tile + residual)
        pl.BlockSpec((1, S, D), lambda b, qi: (b, 0, 0)),     # x (full sequence for K/V)
        const((D, D)),          # wq (pre-scaled)
        const((D, 2 * D)),      # [wk | wv]
        const((D, D)),          # wo
        const((D, F)),          # w1
        const((F, D)),          # w2
        const((9, D)),          # packed biases / LN params
        const((1, F)),          # b1
    ]

    kernel = functools.partial(encoder_layer_kernel,
                               num_heads=num_heads, ffn_chunk=ffn_chunk)

    return pl.pallas_call(
        kernel,
        out_shape=jax.ShapeDtypeStruct((B, S, D), jnp.float32),
        grid_spec=pltpu.PrefetchScalarGridSpec(
            num_scalar_prefetch=0,
            grid=(B, nq),
            in_specs=in_specs,
            out_specs=pl.BlockSpec((1, ts, D), lambda b, qi: (b, qi, 0)),
            scratch_shapes=[
                pltpu.VMEM((2 * num_heads, S, dh), cdt),   # head-major K,V cache
                pltpu.VMEM((num_heads, ts, dh), cdt),      # head-major Q tile
                pltpu.VMEM((ts, D), cdt),                  # merged attention context
            ],
        ),
        compiler_params=pltpu.CompilerParams(
            # qi must stay sequential (K/V cached at qi==0); batch axis feeds both TCs.
            dimension_semantics=("parallel", "arbitrary"),
            vmem_limit_bytes=48 * 1024 * 1024,             # safe on v5e/v6e/v7x
        ),
    )(x, x, wq, wkv, wo, w1, w2, vecd, b1)


def init_params(key, d_model, ffn_dim):
    ks = jax.random.split(key, 6)
    std = 0.02
    return {
        "wq": jax.random.normal(ks[0], (d_model, d_model), jnp.float32) * std,
        "wk": jax.random.normal(ks[1], (d_model, d_model), jnp.float32) * std,
        "wv": jax.random.normal(ks[2], (d_model, d_model), jnp.float32) * std,
        "wo": jax.random.normal(ks[3], (d_model, d_model), jnp.float32) * std,
        "w1": jax.random.normal(ks[4], (d_model, ffn_dim), jnp.float32) * std,
        "w2": jax.random.normal(ks[5], (ffn_dim, d_model), jnp.float32) * std,
        "bq": jnp.zeros((1, d_model), jnp.float32),
        "bk": jnp.zeros((1, d_model), jnp.float32),
        "bv": jnp.zeros((1, d_model), jnp.float32),
        "bo": jnp.zeros((1, d_model), jnp.float32),
        "b1": jnp.zeros((1, ffn_dim), jnp.float32),
        "b2": jnp.zeros((1, d_model), jnp.float32),
        "ln1_g": jnp.ones((1, d_model), jnp.float32),
        "ln1_b": jnp.zeros((1, d_model), jnp.float32),
        "ln2_g": jnp.ones((1, d_model), jnp.float32),
        "ln2_b": jnp.zeros((1, d_model), jnp.float32),
    }


def reference_jax(x, p, num_heads):
    # Pure-JAX f32 reference of the same forward pass.
    B, S, D = x.shape
    dh = D // num_heads
    q = x @ p["wq"] + p["bq"]
    k = x @ p["wk"] + p["bk"]
    v = x @ p["wv"] + p["bv"]

    def split(t):
        return t.reshape(B, S, num_heads, dh).transpose(0, 2, 1, 3)

    qh, kh, vh = split(q), split(k), split(v)
    s = jnp.einsum("bhqd,bhkd->bhqk", qh, kh) * (dh ** -0.5)
    a = jax.nn.softmax(s, axis=-1)
    ctx = jnp.einsum("bhqk,bhkd->bhqd", a, vh).transpose(0, 2, 1, 3).reshape(B, S, D)

    def ln(t, g, b):
        m = t.mean(-1, keepdims=True)
        var = ((t - m) ** 2).mean(-1, keepdims=True)
        return (t - m) / jnp.sqrt(var + 1e-5) * g + b

    y1 = ln(x + ctx @ p["wo"] + p["bo"], p["ln1_g"], p["ln1_b"])
    ff = jnp.maximum(y1 @ p["w1"] + p["b1"], 0.0) @ p["w2"] + p["b2"]
    return ln(y1 + ff, p["ln2_g"], p["ln2_b"])


if __name__ == "__main__":
    # Small, lane-dense shapes: batch=2, seq=16, d_model=128 (multiple of 128),
    # heads=4 (dh=32), ffn_dim=256.
    B, S, D, H, F = 2, 16, 128, 4, 256
    key = jax.random.PRNGKey(0)
    kx, kp = jax.random.split(key)
    x = jax.random.normal(kx, (B, S, D), jnp.float32)
    params = init_params(kp, D, F)

    out = jax.block_until_ready(encoder_layer(x, params, num_heads=H))
    ref = reference_jax(x, params, H)

    assert out.shape == (B, S, D)
    max_err = float(jnp.max(jnp.abs(out - ref)))
    # bf16 matmul operands + approx reciprocal => tolerance looser than pure f32.
    assert max_err < 2e-2, f"mismatch vs JAX reference: max abs err {max_err}"
    print("KERNEL_OK")
</pallas_src>

<mosaic_0001>
module attributes {stable_mosaic.version = 11 : i64} {
  func.func @encoder_layer_kernel(%arg0: i32, %arg1: i32, %arg2: memref<1x16x128xf32, #tpu.memory_space<vmem>>, %arg3: memref<1x16x128xf32, #tpu.memory_space<vmem>>, %arg4: memref<128x128xbf16, #tpu.memory_space<vmem>>, %arg5: memref<128x256xbf16, #tpu.memory_space<vmem>>, %arg6: memref<128x128xbf16, #tpu.memory_space<vmem>>, %arg7: memref<128x256xbf16, #tpu.memory_space<vmem>>, %arg8: memref<256x128xbf16, #tpu.memory_space<vmem>>, %arg9: memref<9x128xf32, #tpu.memory_space<vmem>>, %arg10: memref<1x256xf32, #tpu.memory_space<vmem>>, %arg11: memref<1x16x128xf32, #tpu.memory_space<vmem>>, %arg12: memref<8x16x32xbf16, #tpu.memory_space<vmem>>, %arg13: memref<4x16x32xbf16, #tpu.memory_space<vmem>>, %arg14: memref<16x128xbf16, #tpu.memory_space<vmem>>) attributes {dimension_semantics = [#tpu.dimension_semantics<parallel>, #tpu.dimension_semantics<arbitrary>], iteration_bounds = array<i64: 2, 1>, scalar_prefetch = 0 : i64, scratch_operands = 3 : i64, tpu.core_type = #tpu.core_type<tc>, window_params = [{transform_indices = @transform_0, window_bounds = array<i64: 1, 16, 128>}, {transform_indices = @transform_1, window_bounds = array<i64: 1, 16, 128>}, {pipeline_mode = #tpu.pipeline_mode<synchronous>, transform_indices = @transform_2, window_bounds = array<i64: 128, 128>}, {pipeline_mode = #tpu.pipeline_mode<synchronous>, transform_indices = @transform_3, window_bounds = array<i64: 128, 256>}, {pipeline_mode = #tpu.pipeline_mode<synchronous>, transform_indices = @transform_4, window_bounds = array<i64: 128, 128>}, {pipeline_mode = #tpu.pipeline_mode<synchronous>, transform_indices = @transform_5, window_bounds = array<i64: 128, 256>}, {pipeline_mode = #tpu.pipeline_mode<synchronous>, transform_indices = @transform_6, window_bounds = array<i64: 256, 128>}, {pipeline_mode = #tpu.pipeline_mode<synchronous>, transform_indices = @transform_7, window_bounds = array<i64: 9, 128>}, {pipeline_mode = #tpu.pipeline_mode<synchronous>, transform_indices = @transform_8, window_bounds = array<i64: 1, 256>}, {transform_indices = @transform_9, window_bounds = array<i64: 1, 16, 128>}]} {
    %c0 = arith.constant 0 : index
    %c0_0 = arith.constant 0 : index
    %0 = vector.load %arg9[%c0, %c0_0] : memref<9x128xf32, #tpu.memory_space<vmem>>, vector<1x128xf32>
    %c1 = arith.constant 1 : index
    %c0_1 = arith.constant 0 : index
    %1 = vector.load %arg9[%c1, %c0_1] : memref<9x128xf32, #tpu.memory_space<vmem>>, vector<1x128xf32>
    %c2 = arith.constant 2 : index
    %c0_2 = arith.constant 0 : index
    %2 = vector.load %arg9[%c2, %c0_2] : memref<9x128xf32, #tpu.memory_space<vmem>>, vector<1x128xf32>
    %c3 = arith.constant 3 : index
    %c0_3 = arith.constant 0 : index
    %3 = vector.load %arg9[%c3, %c0_3] : memref<9x128xf32, #tpu.memory_space<vmem>>, vector<1x128xf32>
    %c4 = arith.constant 4 : index
    %c0_4 = arith.constant 0 : index
    %4 = vector.load %arg9[%c4, %c0_4] : memref<9x128xf32, #tpu.memory_space<vmem>>, vector<1x128xf32>
    %c5 = arith.constant 5 : index
    %c0_5 = arith.constant 0 : index
    %5 = vector.load %arg9[%c5, %c0_5] : memref<9x128xf32, #tpu.memory_space<vmem>>, vector<1x128xf32>
    %c6 = arith.constant 6 : index
    %c0_6 = arith.constant 0 : index
    %6 = vector.load %arg9[%c6, %c0_6] : memref<9x128xf32, #tpu.memory_space<vmem>>, vector<1x128xf32>
    %c7 = arith.constant 7 : index
    %c0_7 = arith.constant 0 : index
    %7 = vector.load %arg9[%c7, %c0_7] : memref<9x128xf32, #tpu.memory_space<vmem>>, vector<1x128xf32>
    %c8 = arith.constant 8 : index
    %c0_8 = arith.constant 0 : index
    %8 = vector.load %arg9[%c8, %c0_8] : memref<9x128xf32, #tpu.memory_space<vmem>>, vector<1x128xf32>
    %c0_i32 = arith.constant 0 : i32
    %9 = arith.cmpi eq, %arg1, %c0_i32 : i32
    %10 = arith.extui %9 : i1 to i32
    %c0_i32_9 = arith.constant 0 : i32
    %11 = arith.cmpi ne, %10, %c0_i32_9 : i32
    scf.if %11 {
      %c0_75 = arith.constant 0 : index
      %c0_76 = arith.constant 0 : index
      %c0_77 = arith.constant 0 : index
      %141 = vector.load %arg3[%c0_75, %c0_76, %c0_77] : memref<1x16x128xf32, #tpu.memory_space<vmem>>, vector<1x16x128xf32>
      %142 = vector.shape_cast %141 : vector<1x16x128xf32> to vector<16x128xf32>
      %143 = arith.truncf %142 : vector<16x128xf32> to vector<16x128xbf16>
      %c0_78 = arith.constant 0 : index
      %c0_79 = arith.constant 0 : index
      %144 = vector.load %arg5[%c0_78, %c0_79] : memref<128x256xbf16, #tpu.memory_space<vmem>>, vector<128x256xbf16>
      %cst_80 = arith.constant dense<0.000000e+00> : vector<16x256xf32>
      %145 = tpu.matmul %143, %144, %cst_80 {dimension_numbers = #tpu.dot_dimension_numbers<[1], [0], [0], [1], [0, 0, 1, 1], [], []>} : vector<16x128xbf16>, vector<128x256xbf16>, vector<16x256xf32> -> vector<16x256xf32>
      %146 = vector.extract_strided_slice %145 {offsets = [0, 0], sizes = [16, 128], strides = [1, 1]} : vector<16x256xf32> to vector<16x128xf32>
      %147 = vector.broadcast %1 : vector<1x128xf32> to vector<16x128xf32>
      %148 = arith.addf %146, %147 : vector<16x128xf32>
      %149 = vector.extract_strided_slice %145 {offsets = [0, 128], sizes = [16, 128], strides = [1, 1]} : vector<16x256xf32> to vector<16x128xf32>
      %150 = vector.broadcast %2 : vector<1x128xf32> to vector<16x128xf32>
      %151 = arith.addf %149, %150 : vector<16x128xf32>
      %152 = arith.truncf %148 : vector<16x128xf32> to vector<16x128xbf16>
      %153 = arith.truncf %151 : vector<16x128xf32> to vector<16x128xbf16>
      %154 = vector.extract_strided_slice %152 {offsets = [0, 0], sizes = [16, 32], strides = [1, 1]} : vector<16x128xbf16> to vector<16x32xbf16>
      %c0_81 = arith.constant 0 : index
      %c0_82 = arith.constant 0 : index
      %c0_83 = arith.constant 0 : index
      %155 = vector.load %arg12[%c0_81, %c0_82, %c0_83] : memref<8x16x32xbf16, #tpu.memory_space<vmem>>, vector<1x16x32xbf16>
      %156 = vector.shape_cast %155 : vector<1x16x32xbf16> to vector<16x32xbf16>
      %157 = vector.shape_cast %154 : vector<16x32xbf16> to vector<1x16x32xbf16>
      tpu.vector_store %arg12[%c0_81, %c0_82, %c0_83], %157 {strides = array<i32>} : memref<8x16x32xbf16, #tpu.memory_space<vmem>>, vector<1x16x32xbf16>,
      %158 = vector.extract_strided_slice %153 {offsets = [0, 0], sizes = [16, 32], strides = [1, 1]} : vector<16x128xbf16> to vector<16x32xbf16>
      %c4_84 = arith.constant 4 : index
      %c0_85 = arith.constant 0 : index
      %c0_86 = arith.constant 0 : index
      %159 = vector.load %arg12[%c4_84, %c0_85, %c0_86] : memref<8x16x32xbf16, #tpu.memory_space<vmem>>, vector<1x16x32xbf16>
      %160 = vector.shape_cast %159 : vector<1x16x32xbf16> to vector<16x32xbf16>
      %161 = vector.shape_cast %158 : vector<16x32xbf16> to vector<1x16x32xbf16>
      tpu.vector_store %arg12[%c4_84, %c0_85, %c0_86], %161 {strides = array<i32>} : memref<8x16x32xbf16, #tpu.memory_space<vmem>>, vector<1x16x32xbf16>,
      %162 = vector.extract_strided_slice %152 {offsets = [0, 32], sizes = [16, 32], strides = [1, 1]} : vector<16x128xbf16> to vector<16x32xbf16>
      %c1_87 = arith.constant 1 : index
      %c0_88 = arith.constant 0 : index
      %c0_89 = arith.constant 0 : index
      %163 = vector.load %arg12[%c1_87, %c0_88, %c0_89] : memref<8x16x32xbf16, #tpu.memory_space<vmem>>, vector<1x16x32xbf16>
      %164 = vector.shape_cast %163 : vector<1x16x32xbf16> to vector<16x32xbf16>
      %165 = vector.shape_cast %162 : vector<16x32xbf16> to vector<1x16x32xbf16>
      tpu.vector_store %arg12[%c1_87, %c0_88, %c0_89], %165 {strides = array<i32>} : memref<8x16x32xbf16, #tpu.memory_space<vmem>>, vector<1x16x32xbf16>,
      %166 = vector.extract_strided_slice %153 {offsets = [0, 32], sizes = [16, 32], strides = [1, 1]} : vector<16x128xbf16> to vector<16x32xbf16>
      %c5_90 = arith.constant 5 : index
      %c0_91 = arith.constant 0 : index
      %c0_92 = arith.constant 0 : index
      %167 = vector.load %arg12[%c5_90, %c0_91, %c0_92] : memref<8x16x32xbf16, #tpu.memory_space<vmem>>, vector<1x16x32xbf16>
      %168 = vector.shape_cast %167 : vector<1x16x32xbf16> to vector<16x32xbf16>
      %169 = vector.shape_cast %166 : vector<16x32xbf16> to vector<1x16x32xbf16>
      tpu.vector_store %arg12[%c5_90, %c0_91, %c0_92], %169 {strides = array<i32>} : memref<8x16x32xbf16, #tpu.memory_space<vmem>>, vector<1x16x32xbf16>,
      %170 = vector.extract_strided_slice %152 {offsets = [0, 64], sizes = [16, 32], strides = [1, 1]} : vector<16x128xbf16> to vector<16x32xbf16>
      %c2_93 = arith.constant 2 : index
      %c0_94 = arith.constant 0 : index
      %c0_95 = arith.constant 0 : index
      %171 = vector.load %arg12[%c2_93, %c0_94, %c0_95] : memref<8x16x32xbf16, #tpu.memory_space<vmem>>, vector<1x16x32xbf16>
      %172 = vector.shape_cast %171 : vector<1x16x32xbf16> to vector<16x32xbf16>
      %173 = vector.shape_cast %170 : vector<16x32xbf16> to vector<1x16x32xbf16>
      tpu.vector_store %arg12[%c2_93, %c0_94, %c0_95], %173 {strides = array<i32>} : memref<8x16x32xbf16, #tpu.memory_space<vmem>>, vector<1x16x32xbf16>,
      %174 = vector.extract_strided_slice %153 {offsets = [0, 64], sizes = [16, 32], strides = [1, 1]} : vector<16x128xbf16> to vector<16x32xbf16>
      %c6_96 = arith.constant 6 : index
      %c0_97 = arith.constant 0 : index
      %c0_98 = arith.constant 0 : index
      %175 = vector.load %arg12[%c6_96, %c0_97, %c0_98] : memref<8x16x32xbf16, #tpu.memory_space<vmem>>, vector<1x16x32xbf16>
      %176 = vector.shape_cast %175 : vector<1x16x32xbf16> to vector<16x32xbf16>
      %177 = vector.shape_cast %174 : vector<16x32xbf16> to vector<1x16x32xbf16>
      tpu.vector_store %arg12[%c6_96, %c0_97, %c0_98], %177 {strides = array<i32>} : memref<8x16x32xbf16, #tpu.memory_space<vmem>>, vector<1x16x32xbf16>,
      %178 = vector.extract_strided_slice %152 {offsets = [0, 96], sizes = [16, 32], strides = [1, 1]} : vector<16x128xbf16> to vector<16x32xbf16>
      %c3_99 = arith.constant 3 : index
      %c0_100 = arith.constant 0 : index
      %c0_101 = arith.constant 0 : index
      %179 = vector.load %arg12[%c3_99, %c0_100, %c0_101] : memref<8x16x32xbf16, #tpu.memory_space<vmem>>, vector<1x16x32xbf16>
      %180 = vector.shape_cast %179 : vector<1x16x32xbf16> to vector<16x32xbf16>
      %181 = vector.shape_cast %178 : vector<16x32xbf16> to vector<1x16x32xbf16>
      tpu.vector_store %arg12[%c3_99, %c0_100, %c0_101], %181 {strides = array<i32>} : memref<8x16x32xbf16, #tpu.memory_space<vmem>>, vector<1x16x32xbf16>,
      %182 = vector.extract_strided_slice %153 {offsets = [0, 96], sizes = [16, 32], strides = [1, 1]} : vector<16x128xbf16> to vector<16x32xbf16>
      %c7_102 = arith.constant 7 : index
      %c0_103 = arith.constant 0 : index
      %c0_104 = arith.constant 0 : index
      %183 = vector.load %arg12[%c7_102, %c0_103, %c0_104] : memref<8x16x32xbf16, #tpu.memory_space<vmem>>, vector<1x16x32xbf16>
      %184 = vector.shape_cast %183 : vector<1x16x32xbf16> to vector<16x32xbf16>
      %185 = vector.shape_cast %182 : vector<16x32xbf16> to vector<1x16x32xbf16>
      tpu.vector_store %arg12[%c7_102, %c0_103, %c0_104], %185 {strides = array<i32>} : memref<8x16x32xbf16, #tpu.memory_space<vmem>>, vector<1x16x32xbf16>,
    } else {
    }
    %c0_10 = arith.constant 0 : index
    %c0_11 = arith.constant 0 : index
    %c0_12 = arith.constant 0 : index
    %12 = vector.load %arg2[%c0_10, %c0_11, %c0_12] : memref<1x16x128xf32, #tpu.memory_space<vmem>>, vector<1x16x128xf32>
    %13 = vector.shape_cast %12 : vector<1x16x128xf32> to vector<16x128xf32>
    %14 = arith.truncf %13 : vector<16x128xf32> to vector<16x128xbf16>
    %c0_13 = arith.constant 0 : index
    %c0_14 = arith.constant 0 : index
    %15 = vector.load %arg4[%c0_13, %c0_14] : memref<128x128xbf16, #tpu.memory_space<vmem>>, vector<128x128xbf16>
    %cst = arith.constant dense<0.000000e+00> : vector<16x128xf32>
    %16 = tpu.matmul %14, %15, %cst {dimension_numbers = #tpu.dot_dimension_numbers<[1], [0], [0], [1], [0, 0, 1, 1], [], []>} : vector<16x128xbf16>, vector<128x128xbf16>, vector<16x128xf32> -> vector<16x128xf32>
    %17 = vector.broadcast %0 : vector<1x128xf32> to vector<16x128xf32>
    %18 = arith.addf %16, %17 : vector<16x128xf32>
    %19 = arith.truncf %18 : vector<16x128xf32> to vector<16x128xbf16>
    %20 = vector.extract_strided_slice %19 {offsets = [0, 0], sizes = [16, 32], strides = [1, 1]} : vector<16x128xbf16> to vector<16x32xbf16>
    %c0_15 = arith.constant 0 : index
    %c0_16 = arith.constant 0 : index
    %c0_17 = arith.constant 0 : index
    %21 = vector.load %arg13[%c0_15, %c0_16, %c0_17] : memref<4x16x32xbf16, #tpu.memory_space<vmem>>, vector<1x16x32xbf16>
    %22 = vector.shape_cast %21 : vector<1x16x32xbf16> to vector<16x32xbf16>
    %23 = vector.shape_cast %20 : vector<16x32xbf16> to vector<1x16x32xbf16>
    tpu.vector_store %arg13[%c0_15, %c0_16, %c0_17], %23 {strides = array<i32>} : memref<4x16x32xbf16, #tpu.memory_space<vmem>>, vector<1x16x32xbf16>,
    %24 = vector.extract_strided_slice %19 {offsets = [0, 32], sizes = [16, 32], strides = [1, 1]} : vector<16x128xbf16> to vector<16x32xbf16>
    %c1_18 = arith.constant 1 : index
    %c0_19 = arith.constant 0 : index
    %c0_20 = arith.constant 0 : index
    %25 = vector.load %arg13[%c1_18, %c0_19, %c0_20] : memref<4x16x32xbf16, #tpu.memory_space<vmem>>, vector<1x16x32xbf16>
    %26 = vector.shape_cast %25 : vector<1x16x32xbf16> to vector<16x32xbf16>
    %27 = vector.shape_cast %24 : vector<16x32xbf16> to vector<1x16x32xbf16>
    tpu.vector_store %arg13[%c1_18, %c0_19, %c0_20], %27 {strides = array<i32>} : memref<4x16x32xbf16, #tpu.memory_space<vmem>>, vector<1x16x32xbf16>,
    %28 = vector.extract_strided_slice %19 {offsets = [0, 64], sizes = [16, 32], strides = [1, 1]} : vector<16x128xbf16> to vector<16x32xbf16>
    %c2_21 = arith.constant 2 : index
    %c0_22 = arith.constant 0 : index
    %c0_23 = arith.constant 0 : index
    %29 = vector.load %arg13[%c2_21, %c0_22, %c0_23] : memref<4x16x32xbf16, #tpu.memory_space<vmem>>, vector<1x16x32xbf16>
    %30 = vector.shape_cast %29 : vector<1x16x32xbf16> to vector<16x32xbf16>
    %31 = vector.shape_cast %28 : vector<16x32xbf16> to vector<1x16x32xbf16>
    tpu.vector_store %arg13[%c2_21, %c0_22, %c0_23], %31 {strides = array<i32>} : memref<4x16x32xbf16, #tpu.memory_space<vmem>>, vector<1x16x32xbf16>,
    %32 = vector.extract_strided_slice %19 {offsets = [0, 96], sizes = [16, 32], strides = [1, 1]} : vector<16x128xbf16> to vector<16x32xbf16>
    %c3_24 = arith.constant 3 : index
    %c0_25 = arith.constant 0 : index
    %c0_26 = arith.constant 0 : index
    %33 = vector.load %arg13[%c3_24, %c0_25, %c0_26] : memref<4x16x32xbf16, #tpu.memory_space<vmem>>, vector<1x16x32xbf16>
    %34 = vector.shape_cast %33 : vector<1x16x32xbf16> to vector<16x32xbf16>
    %35 = vector.shape_cast %32 : vector<16x32xbf16> to vector<1x16x32xbf16>
    tpu.vector_store %arg13[%c3_24, %c0_25, %c0_26], %35 {strides = array<i32>} : memref<4x16x32xbf16, #tpu.memory_space<vmem>>, vector<1x16x32xbf16>,
    %c0_27 = arith.constant 0 : index
    %c0_28 = arith.constant 0 : index
    %c0_29 = arith.constant 0 : index
    %36 = vector.load %arg13[%c0_27, %c0_28, %c0_29] : memref<4x16x32xbf16, #tpu.memory_space<vmem>>, vector<4x16x32xbf16>
    %c0_30 = arith.constant 0 : index
    %c0_31 = arith.constant 0 : index
    %c0_32 = arith.constant 0 : index
    %37 = vector.load %arg12[%c0_30, %c0_31, %c0_32] : memref<8x16x32xbf16, #tpu.memory_space<vmem>>, vector<4x16x32xbf16>
    %c4_33 = arith.constant 4 : index
    %c0_34 = arith.constant 0 : index
    %c0_35 = arith.constant 0 : index
    %38 = vector.load %arg12[%c4_33, %c0_34, %c0_35] : memref<8x16x32xbf16, #tpu.memory_space<vmem>>, vector<4x16x32xbf16>
    "tpu.trace_start"() <{level = 10 : i32, message = "hqd,hkd->hqk"}> : () -> ()
    %cst_36 = arith.constant dense<0.000000e+00> : vector<4x16x16xf32>
    %39 = tpu.matmul %36, %37, %cst_36 {dimension_numbers = #tpu.dot_dimension_numbers<[2], [2], [1], [1], [0, 0, 0, 1, 1, 1], [0], [0]>} : vector<4x16x32xbf16>, vector<4x16x32xbf16>, vector<4x16x16xf32> -> vector<4x16x16xf32>
    "tpu.trace_stop"() : () -> ()
    %cst_37 = arith.constant dense<0xFF800000> : vector<4x16xf32>
    %40 = vector.multi_reduction <maximumf>, %39, %cst_37 [2] : vector<4x16x16xf32> to vector<4x16xf32>
    %41 = vector.shape_cast %40 : vector<4x16xf32> to vector<4x16x1xf32>
    %42 = vector.broadcast %41 : vector<4x16x1xf32> to vector<4x16x16xf32>
    %43 = arith.subf %39, %42 : vector<4x16x16xf32>
    %44 = math.exp %43 : vector<4x16x16xf32>
    %cst_38 = arith.constant dense<0.000000e+00> : vector<4x16xf32>
    %45 = vector.multi_reduction <add>, %44, %cst_38 [2] : vector<4x16x16xf32> to vector<4x16xf32>
    %46 = vector.shape_cast %45 : vector<4x16xf32> to vector<4x16x1xf32>
    %47 = tpu.reciprocal %46 {approx = true} : vector<4x16x1xf32> -> vector<4x16x1xf32>
    %48 = vector.broadcast %47 : vector<4x16x1xf32> to vector<4x16x16xf32>
    %49 = arith.mulf %44, %48 : vector<4x16x16xf32>
    %50 = arith.truncf %49 : vector<4x16x16xf32> to vector<4x16x16xbf16>
    "tpu.trace_start"() <{level = 10 : i32, message = "hqk,hkd->hqd"}> : () -> ()
    %cst_39 = arith.constant dense<0.000000e+00> : vector<4x16x32xf32>
    %51 = tpu.matmul %50, %38, %cst_39 {dimension_numbers = #tpu.dot_dimension_numbers<[2], [1], [1], [2], [0, 0, 0, 1, 1, 2], [0], [0]>} : vector<4x16x16xbf16>, vector<4x16x32xbf16>, vector<4x16x32xf32> -> vector<4x16x32xf32>
    "tpu.trace_stop"() : () -> ()
    %52 = vector.extract_strided_slice %51 {offsets = [0, 0, 0], sizes = [1, 16, 32], strides = [1, 1, 1]} : vector<4x16x32xf32> to vector<1x16x32xf32>
    %53 = vector.shape_cast %52 : vector<1x16x32xf32> to vector<16x32xf32>
    %54 = arith.truncf %53 : vector<16x32xf32> to vector<16x32xbf16>
    %c0_40 = arith.constant 0 : index
    %c0_41 = arith.constant 0 : index
    %55 = vector.load %arg14[%c0_40, %c0_41] : memref<16x128xbf16, #tpu.memory_space<vmem>>, vector<16x32xbf16>
    tpu.vector_store %arg14[%c0_40, %c0_41], %54 {strides = array<i32>} : memref<16x128xbf16, #tpu.memory_space<vmem>>, vector<16x32xbf16>,
    %56 = vector.extract_strided_slice %51 {offsets = [1, 0, 0], sizes = [1, 16, 32], strides = [1, 1, 1]} : vector<4x16x32xf32> to vector<1x16x32xf32>
    %57 = vector.shape_cast %56 : vector<1x16x32xf32> to vector<16x32xf32>
    %58 = arith.truncf %57 : vector<16x32xf32> to vector<16x32xbf16>
    %c0_42 = arith.constant 0 : index
    %c32 = arith.constant 32 : index
    %59 = vector.load %arg14[%c0_42, %c32] : memref<16x128xbf16, #tpu.memory_space<vmem>>, vector<16x32xbf16>
    tpu.vector_store %arg14[%c0_42, %c32], %58 {strides = array<i32>} : memref<16x128xbf16, #tpu.memory_space<vmem>>, vector<16x32xbf16>,
    %60 = vector.extract_strided_slice %51 {offsets = [2, 0, 0], sizes = [1, 16, 32], strides = [1, 1, 1]} : vector<4x16x32xf32> to vector<1x16x32xf32>
    %61 = vector.shape_cast %60 : vector<1x16x32xf32> to vector<16x32xf32>
    %62 = arith.truncf %61 : vector<16x32xf32> to vector<16x32xbf16>
    %c0_43 = arith.constant 0 : index
    %c64 = arith.constant 64 : index
    %63 = vector.load %arg14[%c0_43, %c64] : memref<16x128xbf16, #tpu.memory_space<vmem>>, vector<16x32xbf16>
    tpu.vector_store %arg14[%c0_43, %c64], %62 {strides = array<i32>} : memref<16x128xbf16, #tpu.memory_space<vmem>>, vector<16x32xbf16>,
    %64 = vector.extract_strided_slice %51 {offsets = [3, 0, 0], sizes = [1, 16, 32], strides = [1, 1, 1]} : vector<4x16x32xf32> to vector<1x16x32xf32>
    %65 = vector.shape_cast %64 : vector<1x16x32xf32> to vector<16x32xf32>
    %66 = arith.truncf %65 : vector<16x32xf32> to vector<16x32xbf16>
    %c0_44 = arith.constant 0 : index
    %c96 = arith.constant 96 : index
    %67 = vector.load %arg14[%c0_44, %c96] : memref<16x128xbf16, #tpu.memory_space<vmem>>, vector<16x32xbf16>
    tpu.vector_store %arg14[%c0_44, %c96], %66 {strides = array<i32>} : memref<16x128xbf16, #tpu.memory_space<vmem>>, vector<16x32xbf16>,
    %c0_45 = arith.constant 0 : index
    %c0_46 = arith.constant 0 : index
    %68 = vector.load %arg14[%c0_45, %c0_46] : memref<16x128xbf16, #tpu.memory_space<vmem>>, vector<16x128xbf16>
    %c0_47 = arith.constant 0 : index
    %c0_48 = arith.constant 0 : index
    %69 = vector.load %arg6[%c0_47, %c0_48] : memref<128x128xbf16, #tpu.memory_space<vmem>>, vector<128x128xbf16>
    %cst_49 = arith.constant dense<0.000000e+00> : vector<16x128xf32>
    %70 = tpu.matmul %68, %69, %cst_49 {dimension_numbers = #tpu.dot_dimension_numbers<[1], [0], [0], [1], [0, 0, 1, 1], [], []>} : vector<16x128xbf16>, vector<128x128xbf16>, vector<16x128xf32> -> vector<16x128xf32>
    %71 = vector.broadcast %3 : vector<1x128xf32> to vector<16x128xf32>
    %72 = arith.addf %70, %71 : vector<16x128xf32>
    %73 = arith.addf %13, %72 : vector<16x128xf32>
    %cst_50 = arith.constant dense<0.000000e+00> : vector<16xf32>
    %74 = vector.multi_reduction <add>, %73, %cst_50 [1] : vector<16x128xf32> to vector<16xf32>
    %75 = vector.shape_cast %74 : vector<16xf32> to vector<16x1xf32>
    %cst_51 = arith.constant 1.280000e+02 : f32
    %76 = vector.broadcast %cst_51 : f32 to vector<16x1xf32>
    %77 = arith.divf %75, %76 : vector<16x1xf32>
    %78 = arith.mulf %73, %73 : vector<16x128xf32>
    %cst_52 = arith.constant dense<0.000000e+00> : vector<16xf32>
    %79 = vector.multi_reduction <add>, %78, %cst_52 [1] : vector<16x128xf32> to vector<16xf32>
    %80 = vector.shape_cast %79 : vector<16xf32> to vector<16x1xf32>
    %cst_53 = arith.constant 1.280000e+02 : f32
    %81 = vector.broadcast %cst_53 : f32 to vector<16x1xf32>
    %82 = arith.divf %80, %81 : vector<16x1xf32>
    %83 = arith.mulf %77, %77 : vector<16x1xf32>
    %84 = arith.subf %82, %83 : vector<16x1xf32>
    %cst_54 = arith.constant 0.000000e+00 : f32
    %85 = vector.broadcast %cst_54 : f32 to vector<16x1xf32>
    %86 = arith.maximumf %84, %85 : vector<16x1xf32>
    %87 = vector.broadcast %77 : vector<16x1xf32> to vector<16x128xf32>
    %88 = arith.subf %73, %87 : vector<16x128xf32>
    %cst_55 = arith.constant 9.99999974E-6 : f32
    %89 = vector.broadcast %cst_55 : f32 to vector<16x1xf32>
    %90 = arith.addf %86, %89 : vector<16x1xf32>
    %91 = math.rsqrt %90 : vector<16x1xf32>
    %92 = vector.broadcast %91 : vector<16x1xf32> to vector<16x128xf32>
    %93 = arith.mulf %88, %92 : vector<16x128xf32>
    %94 = vector.broadcast %4 : vector<1x128xf32> to vector<16x128xf32>
    %95 = arith.mulf %93, %94 : vector<16x128xf32>
    %96 = vector.broadcast %5 : vector<1x128xf32> to vector<16x128xf32>
    %97 = arith.addf %95, %96 : vector<16x128xf32>
    %98 = arith.truncf %97 : vector<16x128xf32> to vector<16x128xbf16>
    %cst_56 = arith.constant 0.000000e+00 : f32
    %99 = vector.broadcast %cst_56 : f32 to vector<16x128xf32>
    %c0_57 = arith.constant 0 : index
    %c0_58 = arith.constant 0 : index
    %100 = vector.load %arg7[%c0_57, %c0_58] : memref<128x256xbf16, #tpu.memory_space<vmem>>, vector<128x256xbf16>
    %cst_59 = arith.constant dense<0.000000e+00> : vector<16x256xf32>
    %101 = tpu.matmul %98, %100, %cst_59 {dimension_numbers = #tpu.dot_dimension_numbers<[1], [0], [0], [1], [0, 0, 1, 1], [], []>} : vector<16x128xbf16>, vector<128x256xbf16>, vector<16x256xf32> -> vector<16x256xf32>
    %c0_60 = arith.constant 0 : index
    %c0_61 = arith.constant 0 : index
    %102 = vector.load %arg10[%c0_60, %c0_61] : memref<1x256xf32, #tpu.memory_space<vmem>>, vector<1x256xf32>
    %103 = vector.broadcast %102 : vector<1x256xf32> to vector<16x256xf32>
    %104 = arith.addf %101, %103 : vector<16x256xf32>
    %cst_62 = arith.constant 0.000000e+00 : f32
    %105 = vector.broadcast %cst_62 : f32 to vector<16x256xf32>
    %106 = arith.maximumf %104, %105 : vector<16x256xf32>
    %107 = arith.truncf %106 : vector<16x256xf32> to vector<16x256xbf16>
    %c0_63 = arith.constant 0 : index
    %c0_64 = arith.constant 0 : index
    %108 = vector.load %arg8[%c0_63, %c0_64] : memref<256x128xbf16, #tpu.memory_space<vmem>>, vector<256x128xbf16>
    %cst_65 = arith.constant dense<0.000000e+00> : vector<16x128xf32>
    %109 = tpu.matmul %107, %108, %cst_65 {dimension_numbers = #tpu.dot_dimension_numbers<[1], [0], [0], [1], [0, 0, 1, 1], [], []>} : vector<16x256xbf16>, vector<256x128xbf16>, vector<16x128xf32> -> vector<16x128xf32>
    %110 = arith.addf %99, %109 : vector<16x128xf32>
    %111 = arith.addf %97, %110 : vector<16x128xf32>
    %112 = vector.broadcast %6 : vector<1x128xf32> to vector<16x128xf32>
    %113 = arith.addf %111, %112 : vector<16x128xf32>
    %cst_66 = arith.constant dense<0.000000e+00> : vector<16xf32>
    %114 = vector.multi_reduction <add>, %113, %cst_66 [1] : vector<16x128xf32> to vector<16xf32>
    %115 = vector.shape_cast %114 : vector<16xf32> to vector<16x1xf32>
    %cst_67 = arith.constant 1.280000e+02 : f32
    %116 = vector.broadcast %cst_67 : f32 to vector<16x1xf32>
    %117 = arith.divf %115, %116 : vector<16x1xf32>
    %118 = arith.mulf %113, %113 : vector<16x128xf32>
    %cst_68 = arith.constant dense<0.000000e+00> : vector<16xf32>
    %119 = vector.multi_reduction <add>, %118, %cst_68 [1] : vector<16x128xf32> to vector<16xf32>
    %120 = vector.shape_cast %119 : vector<16xf32> to vector<16x1xf32>
    %cst_69 = arith.constant 1.280000e+02 : f32
    %121 = vector.broadcast %cst_69 : f32 to vector<16x1xf32>
    %122 = arith.divf %120, %121 : vector<16x1xf32>
    %123 = arith.mulf %117, %117 : vector<16x1xf32>
    %124 = arith.subf %122, %123 : vector<16x1xf32>
    %cst_70 = arith.constant 0.000000e+00 : f32
    %125 = vector.broadcast %cst_70 : f32 to vector<16x1xf32>
    %126 = arith.maximumf %124, %125 : vector<16x1xf32>
    %127 = vector.broadcast %117 : vector<16x1xf32> to vector<16x128xf32>
    %128 = arith.subf %113, %127 : vector<16x128xf32>
    %cst_71 = arith.constant 9.99999974E-6 : f32
    %129 = vector.broadcast %cst_71 : f32 to vector<16x1xf32>
    %130 = arith.addf %126, %129 : vector<16x1xf32>
    %131 = math.rsqrt %130 : vector<16x1xf32>
    %132 = vector.broadcast %131 : vector<16x1xf32> to vector<16x128xf32>
    %133 = arith.mulf %128, %132 : vector<16x128xf32>
    %134 = vector.broadcast %7 : vector<1x128xf32> to vector<16x128xf32>
    %135 = arith.mulf %133, %134 : vector<16x128xf32>
    %136 = vector.broadcast %8 : vector<1x128xf32> to vector<16x128xf32>
    %137 = arith.addf %135, %136 : vector<16x128xf32>
    %c0_72 = arith.constant 0 : index
    %c0_73 = arith.constant 0 : index
    %c0_74 = arith.constant 0 : index
    %138 = vector.load %arg11[%c0_72, %c0_73, %c0_74] : memref<1x16x128xf32, #tpu.memory_space<vmem>>, vector<1x16x128xf32>
    %139 = vector.shape_cast %138 : vector<1x16x128xf32> to vector<16x128xf32>
    %140 = vector.shape_cast %137 : vector<16x128xf32> to vector<1x16x128xf32>
    tpu.vector_store %arg11[%c0_72, %c0_73, %c0_74], %140 {strides = array<i32>} : memref<1x16x128xf32, #tpu.memory_space<vmem>>, vector<1x16x128xf32>,
    return
  }
  func.func @transform_0(%arg0: i32, %arg1: i32) -> (i32, i32, i32) {
    %c0_i32 = arith.constant 0 : i32
    %c0_i32_0 = arith.constant 0 : i32
    return %arg0, %arg1, %c0_i32 : i32, i32, i32
  }
  func.func @transform_1(%arg0: i32, %arg1: i32) -> (i32, i32, i32) {
    %c0_i32 = arith.constant 0 : i32
    %c0_i32_0 = arith.constant 0 : i32
    %c0_i32_1 = arith.constant 0 : i32
    return %arg0, %c0_i32, %c0_i32_0 : i32, i32, i32
  }
  func.func @transform_2(%arg0: i32, %arg1: i32) -> (i32, i32) {
    %c0_i32 = arith.constant 0 : i32
    %c0_i32_0 = arith.constant 0 : i32
    %c0_i32_1 = arith.constant 0 : i32
    return %c0_i32, %c0_i32_0 : i32, i32
  }
  func.func @transform_3(%arg0: i32, %arg1: i32) -> (i32, i32) {
    %c0_i32 = arith.constant 0 : i32
    %c0_i32_0 = arith.constant 0 : i32
    %c0_i32_1 = arith.constant 0 : i32
    return %c0_i32, %c0_i32_0 : i32, i32
  }
  func.func @transform_4(%arg0: i32, %arg1: i32) -> (i32, i32) {
    %c0_i32 = arith.constant 0 : i32
    %c0_i32_0 = arith.constant 0 : i32
    %c0_i32_1 = arith.constant 0 : i32
    return %c0_i32, %c0_i32_0 : i32, i32
  }
  func.func @transform_5(%arg0: i32, %arg1: i32) -> (i32, i32) {
    %c0_i32 = arith.constant 0 : i32
    %c0_i32_0 = arith.constant 0 : i32
    %c0_i32_1 = arith.constant 0 : i32
    return %c0_i32, %c0_i32_0 : i32, i32
  }
  func.func @transform_6(%arg0: i32, %arg1: i32) -> (i32, i32) {
    %c0_i32 = arith.constant 0 : i32
    %c0_i32_0 = arith.constant 0 : i32
    %c0_i32_1 = arith.constant 0 : i32
    return %c0_i32, %c0_i32_0 : i32, i32
  }
  func.func @transform_7(%arg0: i32, %arg1: i32) -> (i32, i32) {
    %c0_i32 = arith.constant 0 : i32
    %c0_i32_0 = arith.constant 0 : i32
    %c0_i32_1 = arith.constant 0 : i32
    return %c0_i32, %c0_i32_0 : i32, i32
  }
  func.func @transform_8(%arg0: i32, %arg1: i32) -> (i32, i32) {
    %c0_i32 = arith.constant 0 : i32
    %c0_i32_0 = arith.constant 0 : i32
    %c0_i32_1 = arith.constant 0 : i32
    return %c0_i32, %c0_i32_0 : i32, i32
  }
  func.func @transform_9(%arg0: i32, %arg1: i32) -> (i32, i32, i32) {
    %c0_i32 = arith.constant 0 : i32
    %c0_i32_0 = arith.constant 0 : i32
    return %arg0, %arg1, %c0_i32 : i32, i32, i32
  }
}

</mosaic_0001>

<bundles_post_ra>
// kernel: tpu_custom_call.1
= control target key start
LH: loop header
LB: loop body
LE: loop exit
PB: predicated region body
PF: predicated region fallthrough
CT: control target
= control target key end

     0   :  { %s3450_s0 = inlined_call_operand.hbm [shape: f32[2,16,128], index: 0, kind: input, shape index: {}]   ;;  %s3451_s1 = inlined_call_operand.hbm [shape: f32[2,16,128], index: 1, kind: input, shape index: {}]   ;;  %s3452_s2 = inlined_call_operand.hbm [shape: bf16[128,128], index: 2, kind: input, shape index: {}]   ;;  %s3453_s3 = inlined_call_operand.hbm [shape: bf16[128,256], index: 3, kind: input, shape index: {}]   ;;  %s3454_s4 = inlined_call_operand.hbm [shape: bf16[128,128], index: 4, kind: input, shape index: {}]   ;;  %s3455_s5 = inlined_call_operand.hbm [shape: bf16[128,256], index: 5, kind: input, shape index: {}]   ;;  %s3456_s6 = inlined_call_operand.hbm [shape: bf16[256,128], index: 6, kind: input, shape index: {}]   ;;  %s3457_s7 = inlined_call_operand.vmem [shape: f32[9,128], index: 7, kind: input, shape index: {}]   ;;  %s3458_s8 = inlined_call_operand.vmem [shape: f32[1,256], index: 8, kind: input, shape index: {}]   ;;  %s3459_s9 = inlined_call_operand.hbm [shape: f32[2,16,128], index: 9, kind: output, shape index: {}]  }
   0x1   :  { %3472 = sst [smem:[#allocation25_spill]] %s3450_s0 }
   0x2   :  { %3473 = sst [smem:[#allocation26_spill]] %s3452_s2 }
   0x3   :  { %3474 = sst [smem:[#allocation27_spill]] %s3453_s3 }
   0x4   :  { %3475 = sst [smem:[#allocation28_spill]] %s3454_s4 }
   0x5   :  { %3476 = sst [smem:[#allocation29_spill]] %s3455_s5 }
   0x6   :  { %3477 = sst [smem:[#allocation30_spill]] %s3456_s6 }
   0x7   :  { %3478 = sst [smem:[#allocation31_spill]] %s3459_s9 }
   0x8   :  { %14 = vsyncpa [#allocation6], 0 }
   0x9   :  { %16 = vsyncpa [#allocation6 + $0x1], 0 }
   0xa   :  { %17 = vsyncpa [#allocation9], 0 }
   0xb   :  { %19 = vsyncpa [#allocation9 + $0x1], 0 }
   0xc   :  { %20 = vsyncpa [#allocation12], 0 }
   0xd   :  { %21 = vsyncpa [#allocation15], 0 }
   0xe   :  { %22 = vsyncpa [#allocation7], 0 }
   0xf   :  { %24 = vsyncpa [#allocation7 + $0x1], 0  ;;  %s2893_s30 = smov 0   ;;  %s2895_s10 = smov 0  }
  0x10   :  { %s2897_s11 = smov 0   ;;  %s2899_s12 = smov 0  }
  0x11   :  { %s2901_s13 = smov 0   ;;  %s2903_s14 = smov 0  }
  0x12 LB: > { %3479 = sst [smem:[#allocation24_spill]] %s2813_s12  ;;  %s2924_s15 = sadd.s32 4294967295, %s2821_s14   ;;  %s2821_s14 = sphi %s2903_s14, %s30_s14   ;;  %s2817_s13 = sphi %s2901_s13, %s3515_s13   ;;  %s2813_s12 = sphi %s2899_s12, %s3514_s12   ;;  %s2809_s11 = sphi %s2897_s11, %s3513_s11   ;;  %s2805_s10 = sphi %s2895_s10, %s3512_s10   ;;  %s2801_s30 = sphi %s2893_s30, %s3511_s30  }
  0x13   : > { %p2018_p0 = scmp.ge.s32.totalorder %s2821_s14, 1  ;;  %p3465_p1 = scmp.eq.s32.totalorder %s2924_s15, 0 }
  0x14   : > { %p276_p2 = scmp.lt.s32.totalorder %s2821_s14, 3  ;;  %s2823_s17 = smov [#allocation10]  }
  0x15   : > { %s288_s18 = sshll.u32 %s2823_s17, 4  ;;  %s2824_s20 = smov [#allocation11]   ;;  %s2933_s18 = int_to_ptr.vmem [resolvable:$true] %s288_s18 }
  0x16   : > { %p2929_p3 = pnand %p2018_p0, %p276_p2  ;;  %s301_s21 = sshll.u32 %s2824_s20, 4  ;;  %s2944_s21 = int_to_ptr.vmem [resolvable:$true] %s301_s21 }
  0x17   : > { %s3482_s2 = sld [smem:[#allocation26_spill]] }
  0x18   : > { %s3480_s16 = scalar_select %p2929_p3, 1, 0 }
  0x19   : > { %p2299_p4 = pneg %p2929_p3 }
  0x1b   : > { %p2940_p6 = pnand %p2299_p4, %p3465_p1 }
  0x1d   : > { %s2523_s24 = scalar_lea.hbm %s3482_s2, 1024  ;;  %p2954_p8 = pneg %p2940_p6 }
  0x1e   : > { %p2524_p7 = scmp.ne.s32.totalorder %s3482_s2, %s2523_s24  ;;  %p2530_p11 = scmp.lt.u32.totalorder %s2523_s24, %s3482_s2 }
  0x20   : > { %p2526_p9 = pnand %p2954_p8, %p2524_p7 }
  0x22   : > { %p2527_p10 = pneg %p2526_p9 }
  0x24   : > { %p2532_p12 = pnand %p2530_p11, %p2527_p10 }
  0x26   : > { %2535 = shalt.err (!%p2532_p12)
}
  0x27   : > { %s2536_s17 = scalar_lea.vmem %s2933_s18, 1024  ;;  %p2544_p4 = scmp.lt.s32.totalorder %s2933_s18, %s2933_s18 }
  0x28   : > { %p2537_p13 = scmp.ne.s32.totalorder %s2933_s18, %s2536_s17  ;;  %p2545_p5 = scmp.lt.s32.totalorder %s2536_s17, %s2536_s17 }
  0x2a   : > { %p2539_p0 = pnand %p2537_p13, %p2954_p8  ;;  %p2546_p7 = por %p2545_p5, %p2544_p4 }
  0x2c   : > { %p2540_p2 = pneg %p2539_p0 }
  0x2e   : > { %p2547_p9 = pnand %p2546_p7, %p2540_p2 }
  0x30   : > { %2550 = shalt.err (!%p2547_p9)
}
  0x31   : > { %s3461_s20 = smov 64   ;;  %s3463_s22 = smov 4  }
  0x32   : > { %2302 = dma.hbm_to_vmem [thread:$0]  (!%p2940_p6), %s3482_s2, 1024, %s2933_s18, [#allocation9], %s3461_s20, %s3461_s20, %s3463_s22  }
  0x33   : > { %s3484_s3 = sld [smem:[#allocation27_spill]] }
  0x39   : > { %s2551_s28 = scalar_lea.hbm %s3484_s3, 2048 }
  0x3a   : > { %p2552_p5 = scmp.ne.s32.totalorder %s3484_s3, %s2551_s28  ;;  %p2558_p12 = scmp.lt.u32.totalorder %s2551_s28, %s3484_s3 }
  0x3c   : > { %p2554_p10 = pnand %p2552_p5, %p2954_p8 }
  0x3e   : > { %p2555_p11 = pneg %p2554_p10 }
  0x40   : > { %p2560_p13 = pnand %p2558_p12, %p2555_p11 }
  0x42   : > { %2563 = shalt.err (!%p2560_p13)
}
  0x43   : > { %s2564_s18 = scalar_lea.vmem %s2944_s21, 2048  ;;  %p2572_p7 = scmp.lt.s32.totalorder %s2944_s21, %s2944_s21 }
  0x44   : > { %p2565_p0 = scmp.ne.s32.totalorder %s2944_s21, %s2564_s18  ;;  %p2573_p9 = scmp.lt.s32.totalorder %s2564_s18, %s2564_s18 }
  0x46   : > { %p2567_p2 = pnand %p2565_p0, %p2954_p8  ;;  %p2574_p5 = por %p2573_p9, %p2572_p7 }
  0x48   : > { %p2568_p4 = pneg %p2567_p2 }
  0x4a   : > { %p2575_p10 = pnand %p2574_p5, %p2568_p4 }
  0x4c   : > { %2578 = shalt.err (!%p2575_p10)
}
  0x4d   : > { %s3467_s23 = smov 128   ;;  %s3469_s9 = smov 8  }
  0x4e   : > { %2305 = dma.hbm_to_vmem [thread:$0]  (!%p2940_p6), %s3484_s3, 2048, %s2944_s21, [#allocation12], %s3467_s23, %s3467_s23, %s3469_s9  }
  0x4f   : > { %s2829_s25 = smov [#allocation14]   ;;  %s2830_s28 = smov [#allocation13]  }
  0x50   : > { %s327_s26 = sshll.u32 %s2829_s25, 4  ;;  %s314_s29 = sshll.u32 %s2830_s28, 4  ;;  %s328_s26 = int_to_ptr.vmem [resolvable:$true] %s327_s26  ;;  %s3004_s29 = int_to_ptr.vmem [resolvable:$true] %s314_s29 }
  0x51   : > { %s3485_s5 = sld [smem:[#allocation29_spill]] }
  0x57   : > { %s2579_s20 = scalar_lea.hbm %s3485_s5, 2048 }
  0x58   : > { %p2580_p11 = scmp.ne.s32.totalorder %s3485_s5, %s2579_s20  ;;  %p2586_p0 = scmp.lt.u32.totalorder %s2579_s20, %s3485_s5 }
  0x5a   : > { %p2582_p12 = pnand %p2580_p11, %p2954_p8 }
  0x5c   : > { %p2583_p13 = pneg %p2582_p12 }
  0x5e   : > { %p2588_p2 = pnand %p2586_p0, %p2583_p13 }
  0x60   : > { %2591 = shalt.err (!%p2588_p2)
}
  0x61   : > { %s2592_s24 = scalar_lea.vmem %s328_s26, 2048  ;;  %p2600_p5 = scmp.lt.s32.totalorder %s328_s26, %s328_s26 }
  0x62   : > { %p2593_p4 = scmp.ne.s32.totalorder %s328_s26, %s2592_s24  ;;  %p2601_p10 = scmp.lt.s32.totalorder %s2592_s24, %s2592_s24 }
  0x64   : > { %p2595_p7 = pnand %p2593_p4, %p2954_p8  ;;  %p2602_p1 = por %p2601_p10, %p2600_p5 }
  0x66   : > { %p2596_p9 = pneg %p2595_p7 }
  0x68   : > { %p2603_p3 = pnand %p2602_p1, %p2596_p9 }
  0x6a   : > { %2606 = shalt.err (!%p2603_p3)
}
  0x6b   : > { %2311 = dma.hbm_to_vmem [thread:$0]  (!%p2940_p6), %s3485_s5, 2048, %s328_s26, [#allocation15], %s3467_s23, %s3467_s23, %s3469_s9  }
  0x6c   : > { %s3486_s4 = sld [smem:[#allocation28_spill]] }
  0x72   : > { %s2607_s28 = scalar_lea.hbm %s3486_s4, 1024 }
  0x73   : > { %p2608_p11 = scmp.ne.s32.totalorder %s3486_s4, %s2607_s28  ;;  %p2614_p12 = scmp.lt.u32.totalorder %s2607_s28, %s3486_s4 }
  0x75   : > { %p2610_p1 = pnand %p2608_p11, %p2954_p8 }
  0x77   : > { %p2611_p3 = pneg %p2610_p1 }
  0x79   : > { %p2616_p13 = pnand %p2614_p12, %p2611_p3 }
  0x7b   : > { %2619 = shalt.err (!%p2616_p13)
}
  0x7c   : > { %s2620_s26 = scalar_lea.vmem %s3004_s29, 1024  ;;  %p2628_p7 = scmp.lt.s32.totalorder %s3004_s29, %s3004_s29 }
  0x7d   : > { %p2621_p0 = scmp.ne.s32.totalorder %s3004_s29, %s2620_s26  ;;  %p2629_p9 = scmp.lt.s32.totalorder %s2620_s26, %s2620_s26 }
  0x7f   : > { %p2623_p2 = pnand %p2621_p0, %p2954_p8  ;;  %p2630_p5 = por %p2629_p9, %p2628_p7 }
  0x81   : > { %p2624_p4 = pneg %p2623_p2 }
  0x83   : > { %p2631_p10 = pnand %p2630_p5, %p2624_p4 }
  0x85   : > { %2634 = shalt.err (!%p2631_p10)
}
  0x86   : > { %s3487_s24 = smov 4   ;;  %s3488_s2 = smov 64  }
  0x87   : > { %2308 = dma.hbm_to_vmem [thread:$0]  (!%p2940_p6), %s3486_s4, 1024, %s3004_s29, [#allocation12], %s3488_s2, %s3488_s2, %s3487_s24  }
  0x88   : > { %s2831_s25 = smov [#allocation16]   ;;  %s3489_s6 = sld [smem:[#allocation30_spill]] }
  0x89   : > { %s340_s28 = sshll.u32 %s2831_s25, 4  ;;  %s341_s28 = int_to_ptr.vmem [resolvable:$true] %s340_s28 }
  0x8e   : > { %s2635_s12 = scalar_lea.hbm %s3489_s6, 2048 }
  0x8f   : > { %p2636_p11 = scmp.ne.s32.totalorder %s3489_s6, %s2635_s12  ;;  %p2642_p12 = scmp.lt.u32.totalorder %s2635_s12, %s3489_s6 }
  0x91   : > { %p2638_p1 = pnand %p2636_p11, %p2954_p8 }
  0x93   : > { %p2639_p3 = pneg %p2638_p1 }
  0x95   : > { %p2644_p13 = pnand %p2642_p12, %p2639_p3 }
  0x97   : > { %2647 = shalt.err (!%p2644_p13)
}
  0x98   : > { %s2648_s29 = scalar_lea.vmem %s341_s28, 2048  ;;  %p2656_p7 = scmp.lt.s32.totalorder %s341_s28, %s341_s28 }
  0x99   : > { %p2649_p0 = scmp.ne.s32.totalorder %s341_s28, %s2648_s29  ;;  %p2657_p9 = scmp.lt.s32.totalorder %s2648_s29, %s2648_s29 }
  0x9b   : > { %p2651_p2 = pnand %p2649_p0, %p2954_p8  ;;  %p2658_p5 = por %p2657_p9, %p2656_p7 }
  0x9d   : > { %p2652_p4 = pneg %p2651_p2 }
  0x9f   : > { %p2659_p10 = pnand %p2658_p5, %p2652_p4 }
  0xa1   : > { %2662 = shalt.err (!%p2659_p10)
}
  0xa2   : > { %2314 = dma.hbm_to_vmem [thread:$0]  (!%p2940_p6), %s3489_s6, 2048, %s341_s28, [#allocation15], %s3488_s2, %s3488_s2, %s3487_s24  }
  0xa3   : > { %s2017_s19 = sadd.s32 4294967294, %s2821_s14   ;;  %s42_s27 = sadd.s32 1, %s2817_s13 }
  0xa4   : > { %s51_s20 = sadd.s32 1, %s2809_s11  ;;  %p44_p8 = scmp.ge.s32.totalorder %s42_s27, 2 }
  0xa5   : > { %p58_p11 = scmp.ne.s32.totalorder %s2809_s11, %s2805_s10  ;;  %p59_p1 = scmp.eq.s32.totalorder %s2821_s14, 0 }
  0xa6   : > { %p64_p3 = scmp.ne.s32.totalorder %s2805_s10, %s2801_s30  ;;  %s3517_s27 = smov (%p44_p8, %s42_s27), 0 }
  0xa7   : > { %p3084_p12 = por %p59_p1, %p58_p11  ;;  %p3491_p13 = scmp.eq.s32.totalorder %s2924_s15, 0 }
  0xa8   : > { %s46_s2 = ssub.s32 %s2817_s13, %s3517_s27  ;;  %p263_p0 = scmp.eq.s32.totalorder %s2924_s15, 1 }
  0xa9   : > { %p3090_p6 = por %p3491_p13, %p64_p3  ;;  %p49_p2 = scmp.eq.s32.totalorder %s46_s2, 0 }
  0xaa   : > { %p269_p4 = scmp.eq.s32.totalorder %s2017_s19, 1  ;;  %p3097_p7 = por %p263_p0, %p58_p11 }
  0xab   : > { %p2331_p9 = scmp.lt.s32.totalorder %s2821_s14, 2  ;;  %s360_s18 = sand.u32 1, %s2809_s11  }
  0xac   : > { %s3493_s25 = scalar_select %p3097_p7, 1, 0 }
  0xad   : > { %s3103_s28 = scalar_select %p49_p2, %s2809_s11, %s51_s20  }
  0xae   : > { %p3105_p5 = por %p269_p4, %p64_p3  ;;  %s2025_s12 = sshll.u32 %s360_s18, 4 }
  0xaf   : > { %s2126_s21 = sshll.u32 %s2817_s13, 8  ;;  %s3495_s0 = sld [smem:[#allocation25_spill]] }
  0xb0   : > { %s3494_s17 = scalar_select %p3105_p5, 1, 0 }
  0xb1   : > { %s364_s9 = scalar_lea.vmem [#allocation5], %s2025_s12  ;;  %p3120_p10 = pnand %p2331_p9, %p3084_p12 }
  0xb2   : > { %s373_s19 = sshll.u32 %s364_s9, 4  ;;  %s3127_s26 = scalar_lea.hbm %s3451_s1, %s2126_s21  ;;  %s3116_s19 = int_to_ptr.vmem [resolvable:$true] %s373_s19 }
  0xb3   : > { %s387_s29 = scalar_lea.vmem [#allocation8], %s2025_s12  ;;  %s3131_s5 = scalar_lea.sflag [#allocation6], %s360_s18 }
  0xb4   : > { %s3129_s4 = sshll.u32 %s387_s29, 4  ;;  %p2665_p11 = pneg %p3120_p10  ;;  %s3163_s4 = int_to_ptr.vmem [resolvable:$true] %s3129_s4 }
  0xb5   : > { %s3114_s23 = scalar_lea.hbm %s3495_s0, %s2126_s21  ;;  %s2668_s3 = scalar_lea.hbm %s3495_s0, 512 }
  0xb6   : > { %s2663_s9 = scalar_lea.hbm %s3114_s23, 256  ;;  %p2669_p12 = scmp.lt.u32.totalorder %s3114_s23, %s3495_s0 }
  0xb7   : > { %p2664_p8 = scmp.ne.s32.totalorder %s3114_s23, %s2663_s9  ;;  %p2670_p13 = scmp.lt.u32.totalorder %s2668_s3, %s2663_s9 }
  0xb8   : > { %p2672_p2 = scmp.lt.u32.totalorder %s2663_s9, %s3114_s23 }
  0xb9   : > { %p2666_p1 = pnand %p2665_p11, %p2664_p8  ;;  %p2671_p0 = por %p2670_p13, %p2669_p12 }
  0xbb   : > { %p2667_p3 = pneg %p2666_p1  ;;  %p2673_p4 = por %p2672_p2, %p2671_p0 }
  0xbd   : > { %p2674_p9 = pnand %p2673_p4, %p2667_p3 }
  0xbf   : > { %2677 = shalt.err (!%p2674_p9)
}
  0xc0   : > { %s2678_s18 = scalar_lea.vmem %s3116_s19, 256  ;;  %s2832_s6 = smov [#allocation5]  }
  0xc1   : > { %p2679_p8 = scmp.ne.s32.totalorder %s3116_s19, %s2678_s18  ;;  %s2683_s12 = sshll.u32 %s2832_s6, 4  ;;  %s2684_s12 = int_to_ptr.vmem [resolvable:$false] %s2683_s12 }
  0xc2   : > { %s2685_s29 = scalar_lea.vmem %s2684_s12, 512  ;;  %p2686_p7 = scmp.lt.s32.totalorder %s3116_s19, %s2684_s12 }
  0xc3   : > { %p2681_p1 = pnand %p2679_p8, %p2665_p11  ;;  %p2687_p12 = scmp.lt.s32.totalorder %s2685_s29, %s2678_s18 }
  0xc5   : > { %p2682_p5 = pneg %p2681_p1  ;;  %p2688_p13 = por %p2687_p12, %p2686_p7 }
  0xc7   : > { %p2689_p0 = pnand %p2688_p13, %p2682_p5 }
  0xc9   : > { %2692 = shalt.err (!%p2689_p0)
}
  0xca   : > { %s3497_s9 = smov 8   ;;  %s3498_s22 = smov 128  }
  0xcb   : > { %2318 = dma.hbm_to_vmem [thread:$0]  (!%p3120_p10), %s3114_s23, 256, %s3116_s19, %s3131_s5, %s3498_s22, %s3498_s22, %s3497_s9  }
  0xcc   : > { %s383_s3 = sand.u32 1, %s2821_s14   ;;  %s2693_s21 = scalar_lea.hbm %s3127_s26, 256 }
  0xcd   : > { %s3166_s2 = scalar_lea.sflag [#allocation9], %s383_s3  ;;  %p2694_p7 = scmp.ne.s32.totalorder %s3127_s26, %s2693_s21 }
  0xce   : > { %s2698_s12 = scalar_lea.hbm %s3451_s1, 512  ;;  %p2699_p2 = scmp.lt.u32.totalorder %s3127_s26, %s3451_s1 }
  0xcf   : > { %p2696_p5 = pnand %p2694_p7, %p2665_p11  ;;  %p2700_p4 = scmp.lt.u32.totalorder %s2698_s12, %s2693_s21 }
  0xd0   : > { %p2702_p8 = scmp.lt.u32.totalorder %s2693_s21, %s3127_s26 }
  0xd1   : > { %p2697_p3 = pneg %p2696_p5  ;;  %p2701_p9 = por %p2700_p4, %p2699_p2 }
  0xd3   : > { %p2703_p1 = por %p2702_p8, %p2701_p9 }
  0xd5   : > { %p2704_p12 = pnand %p2703_p1, %p2697_p3 }
  0xd7   : > { %2707 = shalt.err (!%p2704_p12)
}
  0xd8   : > { %s2708_s5 = scalar_lea.vmem %s3163_s4, 256  ;;  %s2833_s23 = smov [#allocation8]  }
  0xd9   : > { %p2709_p13 = scmp.ne.s32.totalorder %s3163_s4, %s2708_s5  ;;  %s2713_s19 = sshll.u32 %s2833_s23, 4  ;;  %s2714_s19 = int_to_ptr.vmem [resolvable:$false] %s2713_s19 }
  0xda   : > { %s2715_s0 = scalar_lea.vmem %s2714_s19, 512  ;;  %p2716_p5 = scmp.lt.s32.totalorder %s3163_s4, %s2714_s19 }
  0xdb   : > { %p2711_p0 = pnand %p2709_p13, %p2665_p11  ;;  %p2717_p2 = scmp.lt.s32.totalorder %s2715_s0, %s2708_s5 }
  0xdd   : > { %p2712_p7 = pneg %p2711_p0  ;;  %p2718_p4 = por %p2717_p2, %p2716_p5 }
  0xdf   : > { %p2719_p9 = pnand %p2718_p4, %p2712_p7 }
  0xe1   : > { %2722 = shalt.err (!%p2719_p9)
}
  0xe2   : > { %2321 = dma.hbm_to_vmem [thread:$0]  (!%p3120_p10), %s3127_s26, 256, %s3163_s4, %s3166_s2, %s3498_s22, %s3498_s22, %s3497_s9  }
  0xe3   : > { %p3499_p11 = scmp.ne.s32.totalorder %s3480_s16, 0 }
  0xe4   : > { %s3198_s3 = sand.u32 (!%p3499_p11), 1, %s2805_s10  }
  0xe5   : > { %406 = sbr.rel (%p3499_p11) target bundleno = 2541 (0x9ed), region = 56  ;;  %s3201_s21 = sshll.u32 (!%p3499_p11), %s3198_s3, 4 }
  0xe6   : > { %s409_s20 = scalar_lea.sflag (!%p3499_p11), [#allocation6], %s3198_s3  ;;  %s412_s18 = scalar_lea.vmem (!%p3499_p11), [#allocation5], %s3201_s21 }
  0xec   : > { %2776 = dma.done.wait (%p3090_p6), %s409_s20, 256  }
  0xed   : > { %2778 = vsyncadd (%p3090_p6), %s409_s20, 4294967040  ;;  %s417_s4 = sand.u32 1, %s2924_s15   ;;  %s421_s26 = scalar_lea.vmem [#allocation8], %s3201_s21 }
  0xee   : > { %s418_s16 = scalar_lea.sflag [#allocation9], %s417_s4 }
  0xef   : > { %2780 = dma.done.wait (%p3090_p6), %s418_s16, 256  }
  0xf0   : > { %2782 = vsyncadd (%p3090_p6), %s418_s16, 4294967040  ;;  %p3500_p10 = scmp.eq.s32.totalorder %s2924_s15, 0 }
  0xf2   : > { %2784 = dma.done.wait (%p3500_p10), [#allocation9], 1024   ;;  %p3501_p3 = pmov %p3500_p10 }
  0xf4   : > { %2786 = vsyncadd (%p3501_p3), [#allocation9], 4294966272  ;;  %p3502_p8 = pmov %p3501_p3 }
  0xf5   : > { %p3503_p1 = pmov %p3501_p3 }
  0xf6   : > { %2788 = dma.done.wait (%p3502_p8), [#allocation12], 3072  }
  0xf7   : > { %2790 = vsyncadd (%p3503_p1), [#allocation12], 4294964224  ;;  %p3504_p12 = pmov %p3503_p1 }
  0xf8   : > { %p3505_p13 = pmov %p3503_p1 }
  0xf9   : > { %2792 = dma.done.wait (%p3504_p12), [#allocation15], 4096  }
  0xfa   : > { %2794 = vsyncadd (%p3505_p13), [#allocation15], 4294963200  ;;  %v2834_v0 = vmov 0.0   ;;  %vm2835_vm0 = vmmov 0   ;;  %v2836_v1 = vmov 0   ;;  %v2405_v3 = vld [vmem:[#allocation10] sm:$0xff]  }
  0xfb   : > { %2185 = vmatprep.subr.bf16.mxu1 %v2834_v0  ;;  %2201 = vmatprep.mubr.msk.bf16.mxu1 %vm2835_vm0, %v2834_v0  ;;  %v2403_v2 = vld [vmem:[#allocation11 + $0x4] ss:$8 sps:$4 sm:$0xff]   ;;  %v2406_v4 = vld [vmem:[#allocation11] ss:$8 sps:$4 sm:$0xff]   ;;  %v2407_v5 = vld [vmem:[#allocation11 + $0x14] ss:$8 sps:$4 sm:$0xff]  }
  0xfc   : > { %628 = vmatprep.mubr.bf16.mxu0 %v2836_v1  ;;  %596 = vmatprep.subr.bf16.mxu0 %v2403_v2  ;;  %v2409_v6 = vld [vmem:[#allocation10 + $0x8] sm:$0xff]   ;;  %v2410_v7 = vld [vmem:[#allocation11 + $0x10] ss:$8 sps:$4 sm:$0xff]   ;;  %v2415_v11 = vld [vmem:[#allocation11 + $0x34] ss:$8 sps:$4 sm:$0xff]   ;;  %vm653_vm1 = vcmask 261120  }
  0xfd   : > { %2186 = vmatpush3.bf16.msra.mxu1 %v2405_v3  ;;  %597 = vmatpush1.bf16.msra.mxu0 %v2406_v4  ;;  %v2411_v8 = vld [vmem:[#allocation11 + $0x24] ss:$8 sps:$4 sm:$0xff]   ;;  %v2413_v9 = vld [vmem:[#allocation10 + $0x10] sm:$0xff]   ;;  %v2414_v10 = vld [vmem:[#allocation11 + $0x20] ss:$8 sps:$4 sm:$0xff]   ;;  %s2837_s12 = smov 96  }
  0xfe   : > { %2187 = vmatprep.subr.bf16.mxu1 %v2834_v0  ;;  %598 = vmatprep.subr.bf16.mxu0 %v2407_v5  ;;  %v2417_v12 = vld [vmem:[#allocation10 + $0x18] sm:$0xff]   ;;  %v2419_v14 = vld [vmem:[#allocation11 + $0x44] ss:$8 sps:$4 sm:$0xff]   ;;  %v2422_v16 = vld [vmem:[#allocation11 + $0x40] ss:$8 sps:$4 sm:$0xff]   ;;  %s2838_s29 = smov 32  }
  0xff   : > { %v2418_v13 = vld [vmem:[#allocation11 + $0x30] ss:$8 sps:$4 sm:$0xff]   ;;  %v2421_v15 = vld [vmem:[#allocation10 + $0x20] sm:$0xff]   ;;  %v2423_v17 = vld [vmem:[#allocation11 + $0x54] ss:$8 sps:$4 sm:$0xff]   ;;  %s2839_s5 = smov 64  }
 0x100   : > { %v2425_v18 = vld [vmem:[#allocation10 + $0x28] sm:$0xff]   ;;  %v2426_v19 = vld [vmem:[#allocation11 + $0x50] ss:$8 sps:$4 sm:$0xff]   ;;  %v2431_v23 = vld [vmem:[#allocation11 + $0x74] ss:$8 sps:$4 sm:$0xff]   ;;  %vm1021_vm2 = vcmask 130048  }
 0x101   : > { %2188 = vmatpush3.bf16.msra.mxu1 %v2409_v6  ;;  %599 = vmatpush1.bf16.msra.mxu0 %v2410_v7  ;;  %v2427_v20 = vld [vmem:[#allocation11 + $0x64] ss:$8 sps:$4 sm:$0xff]   ;;  %v2429_v21 = vld [vmem:[#allocation10 + $0x30] sm:$0xff]   ;;  %v2430_v22 = vld [vmem:[#allocation11 + $0x60] ss:$8 sps:$4 sm:$0xff]   ;;  %vm1297_vm3 = vcmask 523520  }
 0x102   : > { %2189 = vmatprep.subr.bf16.mxu1 %v2834_v0  ;;  %600 = vmatprep.subr.bf16.mxu0 %v2411_v8  ;;  %v2433_v24 = vld [vmem:[#allocation10 + $0x38] sm:$0xff]   ;;  %v3239_v25 = vld [vmem:[%s412_s18] sm:$0xff]  ;;  %vm1304_vm4 = vcmask 785920   ;;  %vm1311_vm5 = vcmask 1048320   ;;  %s3506_s9 = sld [smem:[#allocation24_spill]]  ;;  %s3507_s20 = sld [smem:[#allocation31_spill]] }
 0x103   : > { %v3243_v26 = vld [vmem:[%s412_s18 + $0x8] sm:$0xff]  ;;  %v497_v28 = vld [vmem:[%s421_s26] sm:$0xff]  ;;  %s1844_s4 = scalar_lea.sflag [#allocation7], %s3198_s3  ;;  %p3508_p0 = scmp.ne.s32.totalorder %s3493_s25, 0 }
 0x104   : > { %v2434_v27 = vld [vmem:[#allocation11 + $0x70] ss:$8 sps:$4 sm:$0xff]   ;;  %v691_v30 = vpack.c.bf16 %v3243_v26, %v3239_v25 }
 0x105   : > { %2190 = vmatpush3.bf16.msra.mxu1 %v2413_v9  ;;  %601 = vmatpush1.bf16.msra.mxu0 %v2414_v10  ;;  %v498_v29 = vld [vmem:[%s421_s26 + $0x8] sm:$0xff] }
 0x106   : > { %2191 = vmatprep.subr.bf16.mxu1 %v2834_v0  ;;  %602 = vmatprep.subr.bf16.mxu0 %v2415_v11  ;;  %v499_v31 = vpack.c.bf16 %v498_v29, %v497_v28  ;;  %v2058_v32 = vld [vmem:[%s3457_s7] ss:$0 sm:$0xff]  ;;  %v2056_v35 = vld [vmem:[%s3457_s7 + $0x1] ss:$0 sm:$0xff]  ;;  %v2057_v38 = vld [vmem:[%s3457_s7 + $0x2] ss:$0 sm:$0xff] }
 0x109   : > { %2192 = vmatpush3.bf16.msra.mxu1 %v2417_v12  ;;  %603 = vmatpush1.bf16.msra.mxu0 %v2418_v13 }
 0x10a   : > { %2193 = vmatprep.subr.bf16.mxu1 %v2834_v0  ;;  %604 = vmatprep.subr.bf16.mxu0 %v2419_v14 }
 0x10d   : > { %2194 = vmatpush3.bf16.msra.mxu1 %v2421_v15  ;;  %605 = vmatpush1.bf16.msra.mxu0 %v2422_v16 }
 0x10e   : > { %2195 = vmatprep.subr.bf16.mxu1 %v2834_v0  ;;  %606 = vmatprep.subr.bf16.mxu0 %v2423_v17 }
 0x111   : > { %2196 = vmatpush3.bf16.msra.mxu1 %v2425_v18  ;;  %607 = vmatpush1.bf16.msra.mxu0 %v2426_v19 }
 0x112   : > { %2197 = vmatprep.subr.bf16.mxu1 %v2834_v0  ;;  %608 = vmatprep.subr.bf16.mxu0 %v2427_v20 }
 0x115   : > { %2198 = vmatpush3.bf16.msra.mxu1 %v2429_v21  ;;  %609 = vmatpush1.bf16.msra.mxu0 %v2430_v22 }
 0x116   : > { %2199 = vmatprep.subr.bf16.mxu1 %v2834_v0  ;;  %610 = vmatprep.subr.bf16.mxu0 %v2431_v23 }
 0x119   : > { %2200 = vmatpush3.bf16.msra.mxu1 %v2433_v24  ;;  %611 = vmatpush1.bf16.msra.mxu0 %v2434_v27 }
 0x11a   : > { %2205 = vmatprep.subr.bf16.mxu1 %v2834_v0  ;;  %2229 = vmatprep.subr.bf16.mxu0 %v2834_v0 }
 0x11c   : > { %2202 = vmatmul.mubr.bf16.vlgmr.msra.gmra.mrb[0].mxu1 %v691_v30  ;;  %629 = vmatmul.mubr.bf16.vlgmr.msra.gmra.mrb[0].mxu0 %v499_v31 }
 0x11d   : > { %2207 = vmatprep.mubr.msk.bf16.mxu1 %vm2835_vm0, %v2834_v0  ;;  %2231 = vmatprep.mubr.msk.bf16.mxu0 %vm2835_vm0, %v2834_v0 }
 0x1ef   : > { %v794_v33 = vpop.f32.mrb[0].mxu1  ;;  %v630_v36 = vpop.f32.mrb[0].mxu0 }
 0x1f0   : > { %v795_v34 = vadd.f32 %v2058_v32, %v794_v33  ;;  %v2203_v37 = vpop.f32.mrb[1].mxu1  ;;  %v632_v39 = vpop.f32.mrb[1].mxu0  ;;  %v643_v44 = vadd.f32 %v2056_v35, %v630_v36 }
 0x1f1   : > { %v797_v40 = vpop.f32.mrb[2].mxu1  ;;  %v634_v42 = vpop.f32.mrb[2].mxu0  ;;  %v649_v47 = vadd.f32 %v2057_v38, %v632_v39 }
 0x1f2   : > { %v798_v41 = vadd.f32 %v2058_v32, %v797_v40  ;;  %v2204_v43 = vpop.f32.mrb[3].mxu1  ;;  %v644_v45 = vadd.f32 %v2056_v35, %v634_v42  ;;  %v636_v46 = vpop.f32.mrb[3].mxu0 }
 0x1f3   : > { %v650_v49 = vadd.f32 %v2057_v38, %v636_v46 }
 0x1f4   : > { %v801_v48 = vpack.c.bf16 %v798_v41, %v795_v34  ;;  %v651_v50 = vpack.c.bf16 %v644_v45, %v643_v44 }
 0x1f5   : > { %v3268_v51 = vpack.c.bf16 %v650_v49, %v649_v47 }
 0x1f6   : > { %803 = vst.msk [vmem:[#allocation3] sm:$0xff] %vm653_vm1, %v801_v48  ;;  %805 = vrot.lane.b32.xlu1 %v801_v48, %s2837_s12  ;;  %654 = vst.msk [vmem:[#allocation2] sm:$0xff] %vm653_vm1, %v651_v50  ;;  %658 = vrot.lane.b32.xlu0 %v651_v50, %s2837_s12 }
 0x1f7   : > { %656 = vst.msk [vmem:[#allocation2 + $0x20] sm:$0xff] %vm653_vm1, %v3268_v51 }
 0x1fa   : > { %679 = vrot.lane.b32.xlu1 %v651_v50, %s2838_s29  ;;  %669 = vrot.lane.b32.xlu0 %v651_v50, %s2839_s5 }
 0x1fd   : > { %v824_v52 = vld [vmem:[#allocation2] sm:$0xff] }
 0x1fe   : > { %815 = vrot.lane.b32.xlu1 %v801_v48, %s2838_s29  ;;  %810 = vrot.lane.b32.xlu0 %v801_v48, %s2839_s5  ;;  %v837_v53 = vsel %vm653_vm1, %v824_v52, 0  ;;  %v829_v54 = vld [vmem:[#allocation2 + $0x20] sm:$0xff] }
 0x1ff   : > { %2206 = vmatpush3.bf16.xpose.msra.mxu1 %v837_v53  ;;  %2230 = vmatpush3.bf16.msra.mxu0 %v829_v54  ;;  %v820_v55 = vld [vmem:[#allocation3] sm:$0xff] }
 0x200   : > { %2211 = vmatprep.subr.bf16.mxu1 %v2834_v0  ;;  %2241 = vmatprep.subr.bf16.mxu0 %v2834_v0 }
 0x206   : > { %2208 = vmatmul.mubr.msk.bf16.vlgmr.msra.gmra.mrb[4].mxu1 %vm653_vm1, %v820_v55 }
 0x207   : > { %2213 = vmatprep.mubr.msk.bf16.mxu1 %vm2835_vm0, %v2834_v0 }
 0x268   : > { %v806_v56 = vpop.permute.xlu1 %805  ;;  %v659_v57 = vpop.permute.xlu0 %658 }
 0x269   : > { %809 = vst.msk [vmem:[#allocation3 + $0x8] sm:$0xff] %vm653_vm1, %v806_v56  ;;  %662 = vst.msk [vmem:[#allocation2 + $0x8] sm:$0xff] %vm653_vm1, %v659_v57 }
 0x26c   : > { %v680_v58 = vpop.permute.xlu1 %679  ;;  %v670_v59 = vpop.permute.xlu0 %669 }
 0x26d   : > { %683 = vst.msk [vmem:[#allocation2 + $0x18] sm:$0xff] %vm653_vm1, %v680_v58  ;;  %673 = vst.msk [vmem:[#allocation2 + $0x10] sm:$0xff] %vm653_vm1, %v670_v59 }
 0x270   : > { %v816_v60 = vpop.permute.xlu1 %815  ;;  %v811_v61 = vpop.permute.xlu0 %810  ;;  %v825_v62 = vld [vmem:[#allocation2 + $0x8] sm:$0xff] }
 0x271   : > { %819 = vst.msk [vmem:[#allocation3 + $0x18] sm:$0xff] %vm653_vm1, %v816_v60  ;;  %814 = vst.msk [vmem:[#allocation3 + $0x10] sm:$0xff] %vm653_vm1, %v811_v61  ;;  %v884_v63 = vsel %vm653_vm1, %v825_v62, 0  ;;  %v821_v3 = vld [vmem:[#allocation3 + $0x8] sm:$0xff] }
 0x272   : > { %2212 = vmatpush3.bf16.xpose.msra.mxu1 %v884_v63 }
 0x273   : > { %2217 = vmatprep.subr.bf16.mxu1 %v2834_v0 }
 0x274   : > { %v826_v2 = vld [vmem:[#allocation2 + $0x10] sm:$0xff]  ;;  %v827_v5 = vld [vmem:[#allocation2 + $0x18] sm:$0xff] }
 0x275   : > { %v931_v4 = vsel %vm653_vm1, %v826_v2, 0  ;;  %v978_v7 = vsel %vm653_vm1, %v827_v5, 0 }
 0x278   : > { %v822_v6 = vld [vmem:[#allocation3 + $0x10] sm:$0xff]  ;;  %v823_v8 = vld [vmem:[#allocation3 + $0x18] sm:$0xff] }
 0x279   : > { %2214 = vmatmul.mubr.msk.bf16.vlgmr.msra.gmra.mrb[8].mxu1 %vm653_vm1, %v821_v3 }
 0x27a   : > { %2218 = vmatpush3.bf16.xpose.msra.mxu1 %v931_v4  ;;  %2219 = vmatprep.mubr.msk.bf16.mxu1 %vm2835_vm0, %v2834_v0 }
 0x27b   : > { %2223 = vmatprep.subr.bf16.mxu1 %v2834_v0 }
 0x281   : > { %2220 = vmatmul.mubr.msk.bf16.vlgmr.msra.gmra.mrb[12].mxu1 %vm653_vm1, %v822_v6 }
 0x282   : > { %2224 = vmatpush3.bf16.xpose.msra.mxu1 %v978_v7  ;;  %2225 = vmatprep.mubr.msk.bf16.mxu1 %vm2835_vm0, %v2834_v0 }
 0x283   : > { %2235 = vmatprep.subr.bf16.mxu1 %v2834_v0 }
 0x289   : > { %2226 = vmatmul.mubr.msk.bf16.vlgmr.msra.gmra.mrb[16].mxu1 %vm653_vm1, %v823_v8 }
 0x28a   : > { %2237 = vmatprep.mubr.msk.bf16.mxu1 %vm2835_vm0, %v2834_v0 }
 0x2d9   : > { %v873_v9 = vpop.f32.mrb[4].mxu1 }
 0x2da   : > { %v2209_v10 = vpop.f32.mrb[5].mxu1  ;;  %v1022_v11 = vsel %vm1021_vm2, %v873_v9, -inf }
 0x2db   : > { %1023 = vmax.xlane.f32.xlu0 %v1022_v11  ;;  %v876_v12 = vpop.f32.mrb[6].mxu1 }
 0x2dc   : > { %v2210_v13 = vpop.f32.mrb[7].mxu1  ;;  %v1025_v14 = vsel %vm1021_vm2, %v876_v12, -inf }
 0x2dd   : > { %1026 = vmax.xlane.f32.xlu1 %v1025_v14 }
 0x34c   : > { %v920_v15 = vpop.f32.mrb[8].mxu1 }
 0x34d   : > { %v2215_v16 = vpop.f32.mrb[9].mxu1  ;;  %v1028_v17 = vsel %vm1021_vm2, %v920_v15, -inf }
 0x34e   : > { %1029 = vmax.xlane.f32.xlu0 %v1028_v17  ;;  %v923_v18 = vpop.f32.mrb[10].mxu1 }
 0x34f   : > { %v2216_v19 = vpop.f32.mrb[11].mxu1  ;;  %v1031_v20 = vsel %vm1021_vm2, %v923_v18, -inf }
 0x352   : > { %1032 = vmax.xlane.f32.xlu0 %v1031_v20 }
 0x354   : > { %v967_v21 = vpop.f32.mrb[12].mxu1 }
 0x355   : > { %v2221_v22 = vpop.f32.mrb[13].mxu1  ;;  %v1034_v23 = vsel %vm1021_vm2, %v967_v21, -inf }
 0x356   : > { %1035 = vmax.xlane.f32.xlu1 %v1034_v23  ;;  %v970_v24 = vpop.f32.mrb[14].mxu1 }
 0x357   : > { %v2222_v27 = vpop.f32.mrb[15].mxu1  ;;  %v1037_v28 = vsel %vm1021_vm2, %v970_v24, -inf }
 0x358   : > { %1038 = vmax.xlane.f32.xlu0 %v1037_v28 }
 0x35c   : > { %v1014_v29 = vpop.f32.mrb[16].mxu1 }
 0x35d   : > { %v2227_v30 = vpop.f32.mrb[17].mxu1  ;;  %v1040_v31 = vsel %vm1021_vm2, %v1014_v29, -inf }
 0x35e   : > { %1041 = vmax.xlane.f32.xlu1 %v1040_v31  ;;  %v1017_v32 = vpop.f32.mrb[18].mxu1 }
 0x35f   : > { %v2228_v33 = vpop.f32.mrb[19].mxu1  ;;  %v1043_v34 = vsel %vm1021_vm2, %v1017_v32, -inf }
 0x360   : > { %1044 = vmax.xlane.f32.xlu0 %v1043_v34 }
 0x368   : > { %v1024_v39 = vpop.xlane.xlu0 %1023 }
 0x369   : > { %v1046_v41 = vsub.f32 %v873_v9, %v1024_v39 }
 0x36a   : > { %v1027_v35 = vpop.xlane.xlu1 %1026 }
 0x36b   : > { %v1047_v36 = vsub.f32 %v876_v12, %v1027_v35  ;;  %v1054_v42 = vmul.f32 1.442695, %v1046_v41 }
 0x36d   : > { %v1056_v37 = vmul.f32 1.442695, %v1047_v36 }
 0x36f   : > { %2483 = vpow2.f32 %v1056_v37  ;;  %664 = vrot.lane.b32.xlu1 %v3268_v51, %s2837_s12 }
 0x370   : > { %2485 = vpow2.f32 %v1054_v42 }
 0x379   : > { %v3316_v38 = vpop.eup %2483 }
 0x37a   : > { %v1073_v40 = vsel %vm1021_vm2, %v3316_v38, 0.0  ;;  %v2486_v43 = vpop.eup %2485 }
 0x37b   : > { %1074 = vadd.xlane.f32.xlu0 %v1073_v40  ;;  %v1070_v44 = vsel %vm1021_vm2, %v2486_v43, 0.0 }
 0x393   : > { %1071 = vadd.xlane.f32.xlu1 %v1070_v44 }
 0x3db   : > { %v1030_v45 = vpop.xlane.xlu0 %1029 }
 0x3dc   : > { %v1048_v46 = vsub.f32 %v920_v15, %v1030_v45 }
 0x3de   : > { %v1058_v47 = vmul.f32 1.442695, %v1048_v46 }
 0x3df   : > { %v1033_v48 = vpop.xlane.xlu0 %1032 }
 0x3e0   : > { %2487 = vpow2.f32 %v1058_v47  ;;  %v1049_v49 = vsub.f32 %v923_v18, %v1033_v48 }
 0x3e2   : > { %v1060_v50 = vmul.f32 1.442695, %v1049_v49  ;;  %v2435_v49 = vld [vmem:[#allocation13] sm:$0xff]  }
 0x3e3   : > { %v1036_v52 = vpop.xlane.xlu1 %1035 }
 0x3e4   : > { %2489 = vpow2.f32 %v1060_v50  ;;  %v1050_v53 = vsub.f32 %v967_v21, %v1036_v52  ;;  %v2436_v50 = vld [vmem:[#allocation13 + $0x8] sm:$0xff]  }
 0x3e5   : > { %v1039_v54 = vpop.xlane.xlu0 %1038 }
 0x3e6   : > { %v1062_v55 = vmul.f32 1.442695, %v1050_v53  ;;  %v1051_v56 = vsub.f32 %v970_v24, %v1039_v54 }
 0x3e8   : > { %2491 = vpow2.f32 %v1062_v55  ;;  %v1064_v57 = vmul.f32 1.442695, %v1051_v56 }
 0x3ea   : > { %v2488_v58 = vpop.eup %2487  ;;  %2493 = vpow2.f32 %v1064_v57  ;;  %v2437_v57 = vld [vmem:[#allocation13 + $0x10] sm:$0xff]  }
 0x3eb   : > { %v1042_v59 = vpop.xlane.xlu1 %1041  ;;  %v1076_v60 = vsel %vm1021_vm2, %v2488_v58, 0.0 }
 0x3ec   : > { %v1052_v61 = vsub.f32 %v1014_v29, %v1042_v59  ;;  %1077 = vadd.xlane.f32.xlu1 %v1076_v60  ;;  %v2440_v60 = vld [vmem:[#allocation13 + $0x28] sm:$0xff]  }
 0x3ed   : > { %v1045_v62 = vpop.xlane.xlu0 %1044 }
 0x3ee   : > { %v2490_v63 = vpop.eup %2489  ;;  %v1066_v2 = vmul.f32 1.442695, %v1052_v61  ;;  %v1053_v3 = vsub.f32 %v1017_v32, %v1045_v62 }
 0x3ef   : > { %v665_v4 = vpop.permute.xlu1 %664  ;;  %v1079_v5 = vsel %vm1021_vm2, %v2490_v63, 0.0 }
 0x3f0   : > { %2495 = vpow2.f32 %v1066_v2  ;;  %v1068_v6 = vmul.f32 1.442695, %v1053_v3  ;;  %668 = vst.msk [vmem:[#allocation2 + $0x28] sm:$0xff] %vm653_vm1, %v665_v4  ;;  %1080 = vadd.xlane.f32.xlu0 %v1079_v5  ;;  %v2441_v3 = vld [vmem:[#allocation13 + $0x30] sm:$0xff]   ;;  %v2442_v4 = vld [vmem:[#allocation13 + $0x38] sm:$0xff]  }
 0x3f2   : > { %v2492_v7 = vpop.eup %2491  ;;  %2497 = vpow2.f32 %v1068_v6 }
 0x3f3   : > { %v1082_v8 = vsel %vm1021_vm2, %v2492_v7, 0.0 }
 0x3f4   : > { %v2494_v9 = vpop.eup %2493  ;;  %1083 = vadd.xlane.f32.xlu1 %v1082_v8 }
 0x3f5   : > { %v1085_v10 = vsel %vm1021_vm2, %v2494_v9, 0.0 }
 0x3f6   : > { %1086 = vadd.xlane.f32.xlu0 %v1085_v10 }
 0x3f7   : > { %v830_v11 = vld [vmem:[#allocation2 + $0x28] sm:$0xff] }
 0x3f8   : > { %2236 = vmatpush3.bf16.msra.mxu1 %v830_v11 }
 0x3f9   : > { %2247 = vmatprep.subr.bf16.mxu1 %v2834_v0 }
 0x3fa   : > { %v2496_v12 = vpop.eup %2495 }
 0x3fb   : > { %v1088_v13 = vsel %vm1021_vm2, %v2496_v12, 0.0 }
 0x3fc   : > { %v2498_v14 = vpop.eup %2497  ;;  %1089 = vadd.xlane.f32.xlu1 %v1088_v13 }
 0x3fd   : > { %v1091_v15 = vsel %vm1021_vm2, %v2498_v14, 0.0 }
 0x3fe   : > { %1092 = vadd.xlane.f32.xlu0 %v1091_v15 }
 0x408   : > { %v1075_v16 = vpop.xlane.xlu0 %1074 }
 0x409   : > { %2499 = vrcp.f32 %v1075_v16 }
 0x40d   : > { %684 = vrot.lane.b32.xlu1 %v3268_v51, %s2838_s29 }
 0x413   : > { %v2500_v18 = vpop.eup %2499 }
 0x414   : > { %674 = vrot.lane.b32.xlu0 %v3268_v51, %s2839_s5  ;;  %v1103_v20 = vmul.f32 %v2500_v18, %v3316_v38  ;;  %v2075_v18 = vld [vmem:[%s3457_s7 + $0x3] ss:$0 sm:$0xff] }
 0x420   : > { %v1072_v17 = vpop.xlane.xlu1 %1071 }
 0x421   : > { %2501 = vrcp.f32 %v1072_v17 }
 0x42b   : > { %v2502_v19 = vpop.eup %2501 }
 0x42c   : > { %v1102_v21 = vmul.f32 %v2502_v19, %v2486_v43 }
 0x42e   : > { %v1110_v22 = vpack.c.bf16 %v1103_v20, %v1102_v21 }
 0x430   : > { %2232 = vmatmul.mubr.msk.bf16.vlgmr.msra.gmra.mrb[4].mxu0 %vm1021_vm2, %v1110_v22 }
 0x431   : > { %2243 = vmatprep.mubr.msk.bf16.mxu0 %vm2835_vm0, %v2834_v0 }
 0x479   : > { %v1078_v23 = vpop.xlane.xlu1 %1077 }
 0x47a   : > { %2503 = vrcp.f32 %v1078_v23 }
 0x47d   : > { %v1081_v24 = vpop.xlane.xlu0 %1080 }
 0x47e   : > { %2505 = vrcp.f32 %v1081_v24 }
 0x481   : > { %v1084_v51 = vpop.xlane.xlu1 %1083 }
 0x483   : > { %v1087_v27 = vpop.xlane.xlu0 %1086 }
 0x484   : > { %v2504_v28 = vpop.eup %2503  ;;  %2507 = vrcp.f32 %v1087_v27 }
 0x485   : > { %v1104_v30 = vmul.f32 %v2504_v28, %v2488_v58  ;;  %2509 = vrcp.f32 %v1084_v51  ;;  %v2438_v58 = vld [vmem:[#allocation13 + $0x18] sm:$0xff]  }
 0x488   : > { %v2506_v29 = vpop.eup %2505 }
 0x489   : > { %v1105_v31 = vmul.f32 %v2506_v29, %v2490_v63  ;;  %v1090_v32 = vpop.xlane.xlu1 %1089 }
 0x48a   : > { %2511 = vrcp.f32 %v1090_v32  ;;  %v2446_v32 = vld [vmem:[#allocation14 + $0x10] ss:$8 sps:$4 sm:$0xff]  }
 0x48b   : > { %v1093_v33 = vpop.xlane.xlu0 %1092  ;;  %v1111_v34 = vpack.c.bf16 %v1105_v31, %v1104_v30  ;;  %v2445_v30 = vld [vmem:[#allocation14 + $0x4] ss:$8 sps:$4 sm:$0xff]   ;;  %v2448_v31 = vld [vmem:[#allocation14 + $0x14] ss:$8 sps:$4 sm:$0xff]  }
 0x48c   : > { %2513 = vrcp.f32 %v1093_v33  ;;  %v2449_v33 = vld [vmem:[#allocation14 + $0x20] ss:$8 sps:$4 sm:$0xff]  }
 0x48d   : > { %v685_v35 = vpop.permute.xlu1 %684  ;;  %2238 = vmatmul.mubr.msk.bf16.vlgmr.msra.gmra.mrb[20].mxu1 %vm1021_vm2, %v1111_v34  ;;  %v2454_v34 = vld [vmem:[#allocation14 + $0x34] ss:$8 sps:$4 sm:$0xff]  }
 0x48e   : > { %688 = vst.msk [vmem:[#allocation2 + $0x38] sm:$0xff] %vm653_vm1, %v685_v35  ;;  %2249 = vmatprep.mubr.msk.bf16.mxu1 %vm2835_vm0, %v2834_v0  ;;  %v2508_v37 = vpop.eup %2507  ;;  %v2452_v35 = vld [vmem:[#allocation14 + $0x30] ss:$8 sps:$4 sm:$0xff]  }
 0x48f   : > { %v675_v36 = vpop.permute.xlu0 %674  ;;  %v2510_v38 = vpop.eup %2509  ;;  %v1107_v40 = vmul.f32 %v2508_v37, %v2494_v9  ;;  %v2457_v37 = vld [vmem:[#allocation14 + $0x44] ss:$8 sps:$4 sm:$0xff]  }
 0x490   : > { %678 = vst.msk [vmem:[#allocation2 + $0x30] sm:$0xff] %vm653_vm1, %v675_v36  ;;  %v1106_v43 = vmul.f32 %v2510_v38, %v2492_v7  ;;  %v2455_v36 = vld [vmem:[#allocation14 + $0x40] ss:$8 sps:$4 sm:$0xff]   ;;  %v2460_v38 = vld [vmem:[#allocation14 + $0x54] ss:$8 sps:$4 sm:$0xff]  }
 0x492   : > { %v1112_v47 = vpack.c.bf16 %v1107_v40, %v1106_v43  ;;  %v2463_v40 = vld [vmem:[#allocation14 + $0x64] ss:$8 sps:$4 sm:$0xff]   ;;  %v2464_v43 = vld [vmem:[#allocation14 + $0x70] ss:$8 sps:$4 sm:$0xff]  }
 0x494   : > { %v2512_v39 = vpop.eup %2511 }
 0x495   : > { %v832_v41 = vld [vmem:[#allocation2 + $0x38] sm:$0xff]  ;;  %v1108_v44 = vmul.f32 %v2512_v39, %v2496_v12 }
 0x496   : > { %v2514_v42 = vpop.eup %2513  ;;  %2248 = vmatpush3.bf16.msra.mxu1 %v832_v41  ;;  %v2458_v39 = vld [vmem:[#allocation14 + $0x50] ss:$8 sps:$4 sm:$0xff]   ;;  %v2461_v41 = vld [vmem:[#allocation14 + $0x60] ss:$8 sps:$4 sm:$0xff]  }
 0x497   : > { %v1109_v45 = vmul.f32 %v2514_v42, %v2498_v14  ;;  %v831_v46 = vld [vmem:[#allocation2 + $0x30] sm:$0xff]  ;;  %1575 = vmatprep.subr.bf16.mxu1 %v2445_v30  ;;  %v2466_v42 = vld [vmem:[#allocation14 + $0x74] ss:$8 sps:$4 sm:$0xff]   ;;  %v1483_v30 = vld [vmem:[%s3458_s8] sm:$0x3] }
 0x498   : > { %2242 = vmatpush3.bf16.msra.mxu0 %v831_v46  ;;  %v2469_v46 = vld [vmem:[#allocation16 + $0x48] sm:$0xff]  }
 0x499   : > { %v1113_v48 = vpack.c.bf16 %v1109_v45, %v1108_v44  ;;  %2253 = vmatprep.subr.bf16.mxu0 %v2834_v0  ;;  %v2467_v44 = vld [vmem:[#allocation16 + $0x40] sm:$0xff]  }
 0x49a   : > { %v2468_v45 = vld [vmem:[#allocation16] sm:$0xff]  }
 0x49b   : > { %2244 = vmatmul.mubr.msk.bf16.vlgmr.msra.gmra.mrb[8].mxu0 %vm1021_vm2, %v1112_v47  ;;  %2250 = vmatmul.mubr.msk.bf16.vlgmr.msra.gmra.mrb[24].mxu1 %vm1021_vm2, %v1113_v48  ;;  %v2470_v47 = vld [vmem:[#allocation16 + $0x8] sm:$0xff]   ;;  %v2471_v48 = vld [vmem:[#allocation16 + $0x50] sm:$0xff]  }
 0x49c   : > { %2269 = vmatprep.mubr.msk.bf16.mxu0 %vm2835_vm0, %v2834_v0  ;;  %1607 = vmatprep.mubr.bf16.mxu1 %v2836_v1  ;;  %v2439_v1 = vld [vmem:[#allocation13 + $0x20] sm:$0xff]  }
 0x49d   : > { %2254 = vmatpush3.bf16.msra.mxu0 %v2435_v49  ;;  %v2472_v49 = vld [vmem:[#allocation16 + $0x10] sm:$0xff]  }
 0x49e   : > { %2255 = vmatprep.subr.bf16.mxu0 %v2834_v0 }
 0x4a1   : > { %2256 = vmatpush3.bf16.msra.mxu0 %v2436_v50  ;;  %v2473_v50 = vld [vmem:[#allocation16 + $0x58] sm:$0xff]  }
 0x4a2   : > { %2257 = vmatprep.subr.bf16.mxu0 %v2834_v0 }
 0x4a5   : > { %2258 = vmatpush3.bf16.msra.mxu0 %v2437_v57 }
 0x4a6   : > { %2259 = vmatprep.subr.bf16.mxu0 %v2834_v0 }
 0x4a9   : > { %2260 = vmatpush3.bf16.msra.mxu0 %v2438_v58 }
 0x4aa   : > { %2261 = vmatprep.subr.bf16.mxu0 %v2834_v0 }
 0x4ad   : > { %2262 = vmatpush3.bf16.msra.mxu0 %v2439_v1 }
 0x4ae   : > { %2263 = vmatprep.subr.bf16.mxu0 %v2834_v0 }
 0x4b1   : > { %2264 = vmatpush3.bf16.msra.mxu0 %v2440_v60 }
 0x4b2   : > { %2265 = vmatprep.subr.bf16.mxu0 %v2834_v0 }
 0x4b5   : > { %2266 = vmatpush3.bf16.msra.mxu0 %v2441_v3 }
 0x4b6   : > { %2267 = vmatprep.subr.bf16.mxu0 %v2834_v0 }
 0x4b9   : > { %2268 = vmatpush3.bf16.msra.mxu0 %v2442_v4 }
 0x4ba   : > { %2163 = vmatprep.subr.bf16.mxu0 %v2467_v44 }
 0x503   : > { %v1151_v52 = vpop.f32.mrb[4].mxu0 }
 0x504   : > { %v2233_v53 = vpop.f32.mrb[5].mxu0 }
 0x505   : > { %v1154_v54 = vpop.f32.mrb[6].mxu0  ;;  %v2475_v53 = vld [vmem:[#allocation16 + $0x60] sm:$0xff]  }
 0x506   : > { %v1290_v55 = vpack.c.bf16 %v1154_v54, %v1151_v52  ;;  %v2234_v56 = vpop.f32.mrb[7].mxu0  ;;  %v2474_v52 = vld [vmem:[#allocation16 + $0x18] sm:$0xff]   ;;  %v2476_v54 = vld [vmem:[#allocation16 + $0x20] sm:$0xff]  }
 0x508   : > { %1291 = vst.msk [vmem:[#allocation4] sm:$0xff] %vm653_vm1, %v1290_v55  ;;  %v2477_v55 = vld [vmem:[#allocation16 + $0x68] sm:$0xff]  }
 0x560   : > { %v1195_v59 = vpop.f32.mrb[20].mxu1 }
 0x561   : > { %v2239_v61 = vpop.f32.mrb[21].mxu1 }
 0x562   : > { %v1198_v62 = vpop.f32.mrb[22].mxu1 }
 0x563   : > { %v1292_v63 = vpack.c.bf16 %v1198_v62, %v1195_v59  ;;  %v2240_v2 = vpop.f32.mrb[23].mxu1 }
 0x565   : > { %1294 = vrot.lane.b32.xlu1 %v1292_v63, %s2838_s29  ;;  %s2128_s29 = sshll.u32 %s3506_s9, 8 }
 0x566   : > { %s3399_s18 = scalar_lea.hbm %s3507_s20, %s2128_s29 }
 0x56e   : > { %v1239_v5 = vpop.f32.mrb[8].mxu0  ;;  %v1283_v6 = vpop.f32.mrb[24].mxu1 }
 0x56f   : > { %v2245_v7 = vpop.f32.mrb[9].mxu0  ;;  %v2251_v8 = vpop.f32.mrb[25].mxu1 }
 0x570   : > { %v1242_v9 = vpop.f32.mrb[10].mxu0  ;;  %v1286_v10 = vpop.f32.mrb[26].mxu1 }
 0x571   : > { %v1299_v11 = vpack.c.bf16 %v1242_v9, %v1239_v5  ;;  %v1306_v12 = vpack.c.bf16 %v1286_v10, %v1283_v6  ;;  %v2246_v13 = vpop.f32.mrb[11].mxu0  ;;  %v2252_v14 = vpop.f32.mrb[27].mxu1 }
 0x573   : > { %1301 = vrot.lane.b32.xlu0 %v1299_v11, %s2839_s5  ;;  %1308 = vrot.lane.b32.xlu1 %v1306_v12, %s2837_s12  ;;  %v2084_v12 = vld [vmem:[%s3457_s7 + $0x4] ss:$0 sm:$0xff]  ;;  %s480_s5 = scalar_lea.vmem [#allocation17], %s3201_s21  ;;  %s2840_s21 = smov [#allocation17]  }
 0x574   : > { %s1859_s23 = sshll.u32 %s480_s5, 4  ;;  %s2727_s26 = sshll.u32 %s2840_s21, 4  ;;  %s3401_s23 = int_to_ptr.vmem [resolvable:$true] %s1859_s23  ;;  %s2728_s26 = int_to_ptr.vmem [resolvable:$false] %s2727_s26 }
 0x575   : > { %s2723_s16 = scalar_lea.vmem %s3401_s23, 256  ;;  %s2729_s15 = scalar_lea.vmem %s2728_s26, 512 }
 0x576   : > { %p2724_p6 = scmp.ne.s32.totalorder %s3401_s23, %s2723_s16  ;;  %p2730_p2 = scmp.lt.s32.totalorder %s3401_s23, %s2728_s26 }
 0x577   : > { %p2731_p4 = scmp.lt.s32.totalorder %s2729_s15, %s2723_s16 }
 0x578   : > { %p2725_p7 = pnand %p2724_p6, %p3508_p0 }
 0x579   : > { %p2732_p9 = por %p2731_p4, %p2730_p2 }
 0x57a   : > { %p2726_p5 = pneg %p2725_p7 }
 0x57c   : > { %p2733_p11 = pnand %p2732_p9, %p2726_p5 }
 0x5d7   : > { %v1295_v15 = vpop.permute.xlu1 %1294 }
 0x5d8   : > { %1298 = vst.msk [vmem:[#allocation4] sm:$0xff] %vm1297_vm3, %v1295_v15 }
 0x5e5   : > { %v1302_v0 = vpop.permute.xlu0 %1301  ;;  %v1309_v16 = vpop.permute.xlu1 %1308 }
 0x5e6   : > { %1305 = vst.msk [vmem:[#allocation4] sm:$0xff] %vm1304_vm4, %v1302_v0 }
 0x5e7   : > { %1312 = vst.msk [vmem:[#allocation4] sm:$0xff] %vm1311_vm5, %v1309_v16  ;;  %v2085_v16 = vld [vmem:[%s3457_s7 + $0x5] ss:$0 sm:$0xff] }
 0x5ee   : > { %v1313_v17 = vld [vmem:[#allocation4] sm:$0xff] }
 0x5ef   : > { %2270 = vmatmul.mubr.bf16.vlgmr.msra.gmra.mrb[12].mxu0 %v1313_v17 }
 0x5f0   : > { %2164 = vmatpush3.bf16.msra.mxu0 %v2468_v45 }
 0x5f1   : > { %2165 = vmatprep.subr.bf16.mxu0 %v2469_v46 }
 0x5f4   : > { %2166 = vmatpush3.bf16.msra.mxu0 %v2470_v47 }
 0x5f5   : > { %2167 = vmatprep.subr.bf16.mxu0 %v2471_v48 }
 0x5f8   : > { %2168 = vmatpush3.bf16.msra.mxu0 %v2472_v49 }
 0x5f9   : > { %2169 = vmatprep.subr.bf16.mxu0 %v2473_v50 }
 0x5fc   : > { %2170 = vmatpush3.bf16.msra.mxu0 %v2474_v52  ;;  %v2118_v52 = vld [vmem:[%s3457_s7 + $0x6] ss:$0 sm:$0xff] }
 0x5fd   : > { %2171 = vmatprep.subr.bf16.mxu0 %v2475_v53 }
 0x600   : > { %2172 = vmatpush3.bf16.msra.mxu0 %v2476_v54 }
 0x601   : > { %2173 = vmatprep.subr.bf16.mxu0 %v2477_v55 }
 0x6c2   : > { %v1416_v19 = vpop.f32.mrb[12].mxu0 }
 0x6c3   : > { %v1417_v20 = vadd.f32 %v2075_v18, %v1416_v19  ;;  %v2271_v21 = vpop.f32.mrb[13].mxu0 }
 0x6c4   : > { %v1419_v22 = vpop.f32.mrb[14].mxu0  ;;  %v2478_v21 = vld [vmem:[#allocation16 + $0x28] sm:$0xff]  }
 0x6c5   : > { %v3363_v23 = vadd.f32 %v1417_v20, %v3239_v25  ;;  %v1420_v24 = vadd.f32 %v2075_v18, %v1419_v22  ;;  %v2272_v51 = vpop.f32.mrb[15].mxu0  ;;  %v2443_v25 = vld [vmem:[#allocation14] ss:$8 sps:$4 sm:$0xff]   ;;  %2174 = vmatpush3.bf16.msra.mxu0 %v2478_v21  ;;  %v2479_v22 = vld [vmem:[#allocation16 + $0x70] sm:$0xff]  }
 0x6c6   : > { %1576 = vmatpush1.bf16.msra.mxu1 %v2443_v25  ;;  %2175 = vmatprep.subr.bf16.mxu0 %v2479_v22  ;;  %v2482_v51 = vld [vmem:[#allocation16 + $0x38] sm:$0xff]  }
 0x6c7   : > { %v3366_v27 = vadd.f32 %v1420_v24, %v3243_v26  ;;  %1425 = vadd.xlane.f32.xlu0 %v3363_v23  ;;  %v1432_v28 = vmul.f32 %v3363_v23, %v3363_v23  ;;  %1577 = vmatprep.subr.bf16.mxu1 %v2448_v31  ;;  %v2451_v26 = vld [vmem:[#allocation14 + $0x24] ss:$8 sps:$4 sm:$0xff]   ;;  %v2481_v24 = vld [vmem:[#allocation16 + $0x78] sm:$0xff]  }
 0x6c9   : > { %1427 = vadd.xlane.f32.xlu1 %v3366_v27  ;;  %v1433_v29 = vmul.f32 %v3366_v27, %v3366_v27 }
 0x6ca   : > { %1578 = vmatpush1.bf16.msra.mxu1 %v2446_v32 }
 0x6cb   : > { %1434 = vadd.xlane.f32.xlu0 %v1432_v28  ;;  %1579 = vmatprep.subr.bf16.mxu1 %v2451_v26 }
 0x6ce   : > { %1580 = vmatpush1.bf16.msra.mxu1 %v2449_v33 }
 0x6cf   : > { %1436 = vadd.xlane.f32.xlu0 %v1433_v29  ;;  %1581 = vmatprep.subr.bf16.mxu1 %v2454_v34 }
 0x6d2   : > { %1582 = vmatpush1.bf16.msra.mxu1 %v2452_v35 }
 0x6d3   : > { %1583 = vmatprep.subr.bf16.mxu1 %v2457_v37 }
 0x6d6   : > { %1584 = vmatpush1.bf16.msra.mxu1 %v2455_v36 }
 0x6d7   : > { %1585 = vmatprep.subr.bf16.mxu1 %v2460_v38 }
 0x6da   : > { %1586 = vmatpush1.bf16.msra.mxu1 %v2458_v39 }
 0x6db   : > { %1587 = vmatprep.subr.bf16.mxu1 %v2463_v40 }
 0x6de   : > { %1588 = vmatpush1.bf16.msra.mxu1 %v2461_v41 }
 0x6df   : > { %1589 = vmatprep.subr.bf16.mxu1 %v2466_v42 }
 0x6e2   : > { %1590 = vmatpush1.bf16.msra.mxu1 %v2464_v43 }
 0x754   : > { %v1426_v56 = vpop.xlane.xlu0 %1425 }
 0x755   : > { %v1430_v57 = vmul.f32 0.0078125, %v1426_v56 }
 0x756   : > { %v1428_v58 = vpop.xlane.xlu1 %1427 }
 0x757   : > { %v1440_v59 = vmul.f32 %v1430_v57, %v1430_v57  ;;  %v1431_v60 = vmul.f32 0.0078125, %v1428_v58  ;;  %v1446_v9 = vsub.f32 %v3363_v23, %v1430_v57  ;;  %v2480_v23 = vld [vmem:[#allocation16 + $0x30] sm:$0xff]  }
 0x758   : > { %v1435_v1 = vpop.xlane.xlu0 %1434  ;;  %2176 = vmatpush3.bf16.msra.mxu0 %v2480_v23 }
 0x759   : > { %v1438_v61 = vmul.f32 0.0078125, %v1435_v1  ;;  %v1441_v2 = vmul.f32 %v1431_v60, %v1431_v60  ;;  %v1447_v13 = vsub.f32 %v3366_v27, %v1431_v60  ;;  %2177 = vmatprep.subr.bf16.mxu0 %v2481_v24  ;;  %v1485_v27 = vlaneseq }
 0x75b   : > { %v1442_v62 = vsub.f32 %v1438_v61, %v1440_v59  ;;  %v1486_v28 = vshrl.u32 %v1485_v27, 7 }
 0x75c   : > { %v1437_v63 = vpop.xlane.xlu0 %1436  ;;  %2178 = vmatpush3.bf16.msra.mxu0 %v2482_v51 }
 0x75d   : > { %v1444_v3 = vmax.f32 %v1442_v62, 0.0  ;;  %v1439_v4 = vmul.f32 0.0078125, %v1437_v63  ;;  %v1487_v29 = vsub.s32 0, %v1486_v28  ;;  %v1491_v25 = vsub.s32 1, %v1486_v28 }
 0x75f   : > { %v1448_v5 = vadd.f32 1e-05, %v1444_v3  ;;  %v1443_v6 = vsub.f32 %v1439_v4, %v1441_v2  ;;  %v1488_v31 = vrot.slane %v1483_v30, %v1487_v29  ;;  %v1492_v32 = vrot.slane %v1483_v30, %v1491_v25 }
 0x761   : > { %2515 = vrsqrt.f32 %v1448_v5  ;;  %v1445_v7 = vmax.f32 %v1443_v6, 0.0 }
 0x763   : > { %v1449_v8 = vadd.f32 1e-05, %v1445_v7 }
 0x765   : > { %2517 = vrsqrt.f32 %v1449_v8 }
 0x76b   : > { %v2516_v10 = vpop.eup %2515 }
 0x76c   : > { %v1452_v11 = vmul.f32 %v2516_v10, %v1446_v9 }
 0x76e   : > { %v1458_v0 = vmul.f32 %v2084_v12, %v1452_v11 }
 0x76f   : > { %v2518_v14 = vpop.eup %2517 }
 0x770   : > { %v1453_v15 = vmul.f32 %v2518_v14, %v1447_v13  ;;  %v1464_v18 = vadd.f32 %v2085_v16, %v1458_v0 }
 0x772   : > { %v1459_v17 = vmul.f32 %v2084_v12, %v1453_v15  ;;  %v2119_v15 = vld [vmem:[%s3457_s7 + $0x7] ss:$0 sm:$0xff] }
 0x774   : > { %v1465_v19 = vadd.f32 %v2085_v16, %v1459_v17 }
 0x776   : > { %v1466_v20 = vpack.c.bf16 %v1465_v19, %v1464_v18 }
 0x778   : > { %1608 = vmatmul.mubr.bf16.vlgmr.msra.gmra.mrb[28].mxu1 %v1466_v20 }
 0x84b   : > { %v1609_v26 = vpop.f32.mrb[28].mxu1 }
 0x84c   : > { %v1610_v33 = vadd.f32 %v1609_v26, %v1488_v31  ;;  %v1611_v34 = vpop.f32.mrb[29].mxu1 }
 0x84d   : > { %v1612_v35 = vadd.f32 %v1611_v34, %v1492_v32  ;;  %v1613_v36 = vpop.f32.mrb[30].mxu1 }
 0x84e   : > { %v1614_v37 = vadd.f32 %v1613_v36, %v1488_v31  ;;  %v1615_v38 = vpop.f32.mrb[31].mxu1  ;;  %v1618_v40 = vmax.f32 %v1610_v33, 0.0 }
 0x84f   : > { %v1616_v39 = vadd.f32 %v1615_v38, %v1492_v32  ;;  %v1619_v42 = vmax.f32 %v1612_v35, 0.0 }
 0x850   : > { %v1620_v41 = vmax.f32 %v1614_v37, 0.0 }
 0x851   : > { %v1621_v43 = vmax.f32 %v1616_v39, 0.0 }
 0x852   : > { %v1622_v44 = vpack.c.bf16 %v1620_v41, %v1618_v40 }
 0x853   : > { %v1623_v45 = vpack.c.bf16 %v1621_v43, %v1619_v42 }
 0x855   : > { %1784 = vmatprep.mubr.bf16.mxu0 %v1623_v45 }
 0x856   : > { %1785 = vmatmul.mubr.bf16.vlgmr.msra.gmra.mrb[16].mxu0 %v1622_v44 }
 0x929   : > { %v2179_v46 = vpop.f32.mrb[16].mxu0 }
 0x92a   : > { %v2180_v47 = vpop.f32.mrb[17].mxu0 }
 0x92b   : > { %v2181_v48 = vadd.f32 %v2180_v47, %v2179_v46  ;;  %v2182_v49 = vpop.f32.mrb[18].mxu0 }
 0x92c   : > { %v2183_v50 = vpop.f32.mrb[19].mxu0 }
 0x92d   : > { %v1793_v53 = vadd.f32 %v2181_v48, %v1464_v18  ;;  %v2184_v54 = vadd.f32 %v2183_v50, %v2182_v49  ;;  %v2120_v18 = vld [vmem:[%s3457_s7 + $0x8] ss:$0 sm:$0xff] }
 0x92f   : > { %v1794_v55 = vadd.f32 %v2184_v54, %v1465_v19  ;;  %v1799_v56 = vadd.f32 %v2118_v52, %v1793_v53 }
 0x931   : > { %1801 = vadd.xlane.f32.xlu1 %v1799_v56  ;;  %v1800_v57 = vadd.f32 %v2118_v52, %v1794_v55  ;;  %v1807_v58 = vmul.f32 %v1799_v56, %v1799_v56 }
 0x933   : > { %1803 = vadd.xlane.f32.xlu0 %v1800_v57  ;;  %v1808_v1 = vmul.f32 %v1800_v57, %v1800_v57 }
 0x935   : > { %1809 = vadd.xlane.f32.xlu1 %v1807_v58 }
 0x937   : > { %1811 = vadd.xlane.f32.xlu0 %v1808_v1 }
 0x9be   : > { %v1802_v59 = vpop.xlane.xlu1 %1801 }
 0x9bf   : > { %v1805_v60 = vmul.f32 0.0078125, %v1802_v59 }
 0x9c0   : > { %v1804_v61 = vpop.xlane.xlu0 %1803 }
 0x9c1   : > { %v1806_v62 = vmul.f32 0.0078125, %v1804_v61  ;;  %v1815_v2 = vmul.f32 %v1805_v60, %v1805_v60  ;;  %v1821_v13 = vsub.f32 %v1799_v56, %v1805_v60 }
 0x9c2   : > { %v1810_v63 = vpop.xlane.xlu1 %1809 }
 0x9c3   : > { %v1813_v3 = vmul.f32 0.0078125, %v1810_v63  ;;  %v1816_v5 = vmul.f32 %v1806_v62, %v1806_v62  ;;  %v1822_v0 = vsub.f32 %v1800_v57, %v1806_v62 }
 0x9c4   : > { %v1812_v4 = vpop.xlane.xlu0 %1811 }
 0x9c5   : > { %v1817_v6 = vsub.f32 %v1813_v3, %v1815_v2  ;;  %v1814_v7 = vmul.f32 0.0078125, %v1812_v4 }
 0x9c7   : > { %v1819_v8 = vmax.f32 %v1817_v6, 0.0  ;;  %v1818_v9 = vsub.f32 %v1814_v7, %v1816_v5 }
 0x9c9   : > { %v1823_v10 = vadd.f32 1e-05, %v1819_v8  ;;  %v1820_v11 = vmax.f32 %v1818_v9, 0.0 }
 0x9cb   : > { %2519 = vrsqrt.f32 %v1823_v10  ;;  %v1824_v12 = vadd.f32 1e-05, %v1820_v11 }
 0x9cd   : > { %2521 = vrsqrt.f32 %v1824_v12 }
 0x9d5   : > { %v2520_v14 = vpop.eup %2519 }
 0x9d6   : > { %v1827_v16 = vmul.f32 %v2520_v14, %v1821_v13 }
 0x9d7   : > { %v2522_v17 = vpop.eup %2521 }
 0x9d8   : > { %v1833_v19 = vmul.f32 %v2119_v15, %v1827_v16  ;;  %v1828_v20 = vmul.f32 %v2522_v17, %v1822_v0 }
 0x9da   : > { %v1839_v21 = vadd.f32 %v2120_v18, %v1833_v19  ;;  %v1834_v22 = vmul.f32 %v2119_v15, %v1828_v20 }
 0x9dc   : > { %v1840_v23 = vadd.f32 %v2120_v18, %v1834_v22  ;;  %1841 = vst [vmem:[%s480_s5] sm:$0xff] %v1839_v21 }
 0x9de   : > { %1842 = vst [vmem:[%s480_s5 + $0x8] sm:$0xff] %v1840_v23 }
 0x9df   : > { %2736 = shalt.err (!%p2733_p11)
}
 0x9e0   : > { %s2737_s24 = scalar_lea.hbm %s3399_s18, 256  ;;  %s2741_s2 = scalar_lea.hbm %s3507_s20, 512 }
 0x9e1   : > { %p2738_p10 = scmp.ne.s32.totalorder %s3399_s18, %s2737_s24  ;;  %p2742_p1 = scmp.lt.u32.totalorder %s3399_s18, %s3507_s20 }
 0x9e2   : > { %p2743_p12 = scmp.lt.u32.totalorder %s2741_s2, %s2737_s24  ;;  %p2745_p6 = scmp.lt.u32.totalorder %s2737_s24, %s3399_s18 }
 0x9e3   : > { %p2739_p3 = pnand %p2738_p10, %p3508_p0 }
 0x9e4   : > { %p2744_p13 = por %p2743_p12, %p2742_p1 }
 0x9e5   : > { %p2740_p8 = pneg %p2739_p3 }
 0x9e6   : > { %p2746_p7 = por %p2745_p6, %p2744_p13 }
 0x9e8   : > { %p2747_p5 = pnand %p2746_p7, %p2740_p8 }
 0x9ea   : > { %2750 = shalt.err (!%p2747_p5)
}
 0x9eb   : > { %s2841_s29 = smov 128   ;;  %s2842_s5 = smov 8  }
 0x9ec   : > { %2297 = dma.vmem_to_hbm [thread:$0]  (%p3508_p0), %s3401_s23, 256, %s3399_s18, %s1844_s4, %s2841_s29, %s2841_s29, %s2842_s5  }
 0x9ed PF: > { %s1874_s19 = sand.u32 1, %s2801_s30   ;;  %p3509_p2 = scmp.ne.s32.totalorder %s3494_s17, 0 }
 0x9ee   : > { %p3510_p4 = scmp.ge.s32.totalorder %s2821_s14, 2  ;;  %s1875_s0 = scalar_lea.sflag [#allocation7], %s1874_s19 }
 0x9f0   : > { %p2323_p9 = pnand %p3510_p4, %p3509_p2 }
 0x9f2   : > { %2796 = dma.done.wait (!%p2323_p9), %s1875_s0, 256  }
 0x9f3   : > { %2798 = vsyncadd (!%p2323_p9), %s1875_s0, 4294967040  ;;  %s30_s14 = sadd.s32 1, %s2821_s14   ;;  %s3511_s30 = smov %s2805_s10 }
 0x9f4   : > { %p27_p11 = scmp.ge.s32.totalorder %s30_s14, 4   ;;  %s3512_s10 = smov %s2809_s11 }
 0x9f5   : > { %s3513_s11 = smov %s3103_s28  ;;  %s3514_s12 = smov %s2817_s13 }
 0x9f6   : > { %s3515_s13 = smov %s3517_s27  ;;  %29 = sbr.rel (!%p27_p11) target bundleno = 18 (0x12), region = 149 }
 0x9fd   :  { %1880 = vsyncpa [#allocation6], 1 }
 0x9fe   :  { %1882 = vsyncpa [#allocation6 + $0x1], 1 }
 0x9ff   :  { %1883 = vsyncpa [#allocation9], 1 }
 0xa00   :  { %1885 = vsyncpa [#allocation9 + $0x1], 1 }
 0xa01   :  { %1886 = vsyncpa [#allocation12], 1 }
 0xa02   :  { %1887 = vsyncpa [#allocation15], 1 }
 0xa03   :  { %1888 = vsyncpa [#allocation7], 1 }
 0xa04   :  { %1890 = vsyncpa [#allocation7 + $0x1], 1 }

</bundles_post_ra>
